<compile_context>
chip_gen: v6e
topology: v6e:2x2x1
jax: 0.10.0
libtpu: 0.0.40
codegen_flags: <defaults>
</compile_context>

<pallas_src>
import jax
import jax.numpy as jnp
from jax.experimental import pallas as pl
from jax.experimental.pallas import tpu as pltpu

K = 5                      # conv kernel size
N_CH = 5                   # conv output channels
IMG = 28                   # input spatial size
CONV_OUT = 24              # 28 - 5 + 1
POOL_OUT = 12              # 24 // 2
CSTACK = N_CH * CONV_OUT   # 120  (conv lanes: c*24 + j)
PSTACK = N_CH * POOL_OUT   # 60   (pooled lanes: c*12 + jo)
FLAT = N_CH * POOL_OUT * POOL_OUT    # 720
HID = 50
HID_PAD = 64               # fc1 hidden padded (two io blocks per 128 lanes)
N_CLS = 10
LANES = 128                # lane width for the FC head / output


def another_net_kernel(tapw_ref, cbl_ref, x_ref, rse_ref, rso_ref,
                       cse_ref, cso_ref, w1_ref, b1_ref, w2_ref, b2_ref,
                       out_ref):
    """Fused forward pass.

    tapw_ref: (25, 120)  f32 VMEM  per-tap lane weights: [dy*5+dx, c*24+j] = conv_w[c,dy,dx]
    cbl_ref:  (1, 120)   f32 VMEM  conv bias lane vector: [0, c*24+j] = conv_b[c]
    x_ref:    (28, 28)   f32 VMEM  input plane
    rse_ref:  (12, 24)   f32 VMEM  row-pool selector (even rows)
    rso_ref:  (12, 24)   f32 VMEM  row-pool selector (odd rows)
    cse_ref:  (120, 60)  f32 VMEM  lane-pool selector (even cols, per channel)
    cso_ref:  (120, 60)  f32 VMEM  lane-pool selector (odd cols, per channel)
    w1_ref:   (60, 768)  f32 VMEM  fc1 W packed: [c*12+jo, io*64 + n], n padded 50->64
    b1_ref:   (1, 64)    f32 VMEM  fc1 bias zero-padded
    w2_ref:   (64, 128)  f32 VMEM  fc2 W^T zero-padded (50,10) -> (64,128)
    b2_ref:   (1, 128)   f32 VMEM  fc2 bias zero-padded
    out_ref:  (1, 128)   f32 VMEM  softmax probs in lanes [0,10), zeros elsewhere
    """
    f32 = jnp.float32

    # ---- Conv2d(1->5, k=5, VALID), lane-stacked across channels.
    #      acc[i, c*24+j] = sum_{dy,dx} conv_w[c,dy,dx] * x[i+dy, j+dx]
    #      25 (24,120) VPU FMAs; the column slice is lane-replicated once per dx.
    acc = jnp.zeros((CONV_OUT, CSTACK), f32)
    for dx in range(K):
        col = x_ref[:, dx:dx + CONV_OUT]                       # (28, 24)
        colrep = jnp.concatenate([col] * N_CH, axis=1)         # (28, 120) lane-replicated
        for dy in range(K):
            acc = acc + tapw_ref[dy * K + dx] * colrep[dy:dy + CONV_OUT, :]
    a_all = jnp.tanh(acc + cbl_ref[...])                       # (24, 120), tanh once

    # ---- MaxPool2d(2): exact 0/1 selection matmuls on the otherwise-idle MXU.
    #      Rows first, then lanes, so the result lands in fc1's LHS layout.
    rmax = jnp.maximum(
        jnp.dot(rse_ref[...], a_all, preferred_element_type=f32),
        jnp.dot(rso_ref[...], a_all, preferred_element_type=f32))   # (12, 120)
    pooled = jnp.maximum(
        jnp.dot(rmax, cse_ref[...], preferred_element_type=f32),
        jnp.dot(rmax, cso_ref[...], preferred_element_type=f32))    # (12, 60): [io, c*12+jo]

    # ---- fc1: one MXU matmul against the packed weight (no transpose needed).
    #      g[io_r, io_c*64 + n] = sum_{c,jo} pooled[io_r, c*12+jo] * W1[n, c*144+io_c*12+jo]
    #      h[n] needs the io_r == io_c diagonal blocks; even io live in the low
    #      64 lanes of each 128-lane tile, odd io in the high 64 lanes.
    g = jnp.dot(pooled, w1_ref[...], preferred_element_type=f32)    # (12, 768)
    acc_e = jnp.zeros((1, 2 * HID_PAD), f32)
    acc_o = jnp.zeros((1, 2 * HID_PAD), f32)
    for m in range(POOL_OUT // 2):                                   # 6 aligned (1,128) adds x2
        acc_e = acc_e + g[2 * m:2 * m + 1, m * 128:(m + 1) * 128]
        acc_o = acc_o + g[2 * m + 1:2 * m + 2, m * 128:(m + 1) * 128]
    hpre = acc_e[:, :HID_PAD] + acc_o[:, HID_PAD:] + b1_ref[...]     # (1, 64) fold halves
    h = jnp.tanh(hpre)                                               # lanes >= 50 stay 0

    # ---- fc2 + softmax over the 10 real classes (padding lanes masked out).
    logits = jnp.dot(h, w2_ref[...], preferred_element_type=f32) + b2_ref[...]   # (1, 128)
    lane = jax.lax.broadcasted_iota(jnp.int32, (1, LANES), 1)
    logits = jnp.where(lane < N_CLS, logits, jnp.float32(-1e30))
    mx = jnp.max(logits, axis=-1, keepdims=True)
    e = jnp.exp(logits - mx)
    s = jnp.sum(e, axis=-1, keepdims=True)
    out_ref[...] = e * pl.reciprocal(s, approx=False)


def prepare_params(params):
    """One-time parameter preprocessing (hoisted out of the per-call forward)."""
    conv_w, conv_b, fc1_w, fc1_b, fc2_w, fc2_b = params
    f32 = jnp.float32

    # Conv taps as per-tap lane vectors + bias lane vector (lanes = c*24 + j).
    cw = conv_w.astype(f32).reshape(N_CH, K * K)                     # [c, dy*5+dx]
    tapw = jnp.repeat(cw.T, CONV_OUT, axis=1)                        # (25, 120)
    cbl = jnp.repeat(conv_b.astype(f32), CONV_OUT).reshape(1, CSTACK)

    # MaxPool 0/1 selection matrices (compile-time constants, built once).
    i24 = jnp.arange(CONV_OUT)
    io12 = jnp.arange(POOL_OUT)
    rse = (i24[None, :] == 2 * io12[:, None]).astype(f32)            # (12, 24)
    rso = (i24[None, :] == 2 * io12[:, None] + 1).astype(f32)
    r = jnp.arange(CSTACK)                                           # c*24 + j
    q = jnp.arange(PSTACK)                                           # c*12 + jo
    same_c = (r[:, None] // CONV_OUT) == (q[None, :] // POOL_OUT)
    jj = r[:, None] % CONV_OUT
    jo = q[None, :] % POOL_OUT
    cse = (same_c & (jj == 2 * jo)).astype(f32)                      # (120, 60)
    cso = (same_c & (jj == 2 * jo + 1)).astype(f32)                  # (120, 60)

    # fc1: W1[n, c*144+io*12+jo] -> w1p[c*12+jo, io*64 + n], n zero-padded 50->64.
    w1 = fc1_w.astype(f32).reshape(HID, N_CH, POOL_OUT, POOL_OUT)    # [n, c, io, jo]
    w1 = jnp.transpose(w1, (1, 3, 2, 0))                             # [c, jo, io, n]
    w1 = jnp.pad(w1, ((0, 0), (0, 0), (0, 0), (0, HID_PAD - HID)))
    w1p = w1.reshape(N_CH * POOL_OUT, POOL_OUT * HID_PAD)            # (60, 768)
    b1p = jnp.pad(fc1_b.astype(f32), (0, HID_PAD - HID)).reshape(1, HID_PAD)

    # fc2: W2^T zero-padded to (64, 128); bias padded to 128 lanes.
    w2p = jnp.zeros((HID_PAD, LANES), f32).at[:HID, :N_CLS].set(fc2_w.T.astype(f32))
    b2p = jnp.pad(fc2_b.astype(f32), (0, LANES - N_CLS)).reshape(1, LANES)
    return (tapw, cbl, rse, rso, cse, cso, w1p, b1p, w2p, b2p)


def another_net_forward(x, prepped):
    tapw, cbl, rse, rso, cse, cso, w1p, b1p, w2p, b2p = prepped
    x2d = x.reshape(IMG, IMG).astype(jnp.float32)
    vmem = pl.BlockSpec(memory_space=pltpu.MemorySpace.VMEM)
    # flops: conv 2*25*24*24*5 + pool 2*(2*12*24*120 + 2*12*120*60)
    #        + fc1 2*12*60*768 + fc2 2*64*128  ~= 1.75 MF
    # bytes: tapw 12K + cbl 0.5K + x 3.1K + selectors 60K + w1p 184K
    #        + b1p/b2p 0.8K + w2p 32K + out 0.5K  ~= 293 KB
    probs_padded = pl.pallas_call(
        another_net_kernel,
        out_shape=jax.ShapeDtypeStruct((1, LANES), jnp.float32),
        in_specs=[vmem] * 11,
        out_specs=vmem,
        cost_estimate=pl.CostEstimate(
            flops=1_750_144, transcendentals=3_072, bytes_accessed=293_888),
    )(tapw, cbl, x2d, rse, rso, cse, cso, w1p, b1p, w2p, b2p)
    # The PyTorch module flattens the batch away (works only for N=1), so
    # softmax(dim=0) is a softmax over the 10 classes.
    return probs_padded[0, :N_CLS]


def reference_forward(x, params):
    """Pure-JAX reference matching the PyTorch forward exactly."""
    conv_w, conv_b, fc1_w, fc1_b, fc2_w, fc2_b = params
    y = jax.lax.conv_general_dilated(
        x, conv_w, (1, 1), 'VALID',
        dimension_numbers=('NCHW', 'OIHW', 'NCHW'))
    y = jnp.tanh(y + conv_b[None, :, None, None])
    y = jax.lax.reduce_window(y, -jnp.inf, jax.lax.max,
                              (1, 1, 2, 2), (1, 1, 2, 2), 'VALID')
    flat = y.reshape(-1)                                  # (720,)
    h = jnp.tanh(flat @ fc1_w.T + fc1_b)
    logits = h @ fc2_w.T + fc2_b
    return jax.nn.softmax(logits, axis=0)


def init_params(key):
    k = jax.random.split(key, 6)
    conv_w = 0.2 * jax.random.normal(k[0], (N_CH, 1, K, K), jnp.float32)
    conv_b = 0.1 * jax.random.normal(k[1], (N_CH,), jnp.float32)
    fc1_w = 0.05 * jax.random.normal(k[2], (HID, FLAT), jnp.float32)
    fc1_b = 0.1 * jax.random.normal(k[3], (HID,), jnp.float32)
    fc2_w = 0.1 * jax.random.normal(k[4], (N_CLS, HID), jnp.float32)
    fc2_b = 0.1 * jax.random.normal(k[5], (N_CLS,), jnp.float32)
    return (conv_w, conv_b, fc1_w, fc1_b, fc2_w, fc2_b)


if __name__ == "__main__":
    key = jax.random.PRNGKey(0)
    kp, kx = jax.random.split(key)
    params = init_params(kp)
    x = jax.random.normal(kx, (1, 1, 28, 28), jnp.float32)

    prepped = prepare_params(params)          # one-time weight preprocessing
    fwd = jax.jit(another_net_forward)

    out = jax.block_until_ready(fwd(x, prepped))
    ref = jax.block_until_ready(reference_forward(x, params))

    assert out.shape == (N_CLS,)
    assert bool(jnp.isfinite(out).all())
    assert bool(jnp.allclose(jnp.sum(out), 1.0, atol=1e-5))
    assert bool(jnp.allclose(out, ref, atol=1e-4, rtol=1e-3))
    print("KERNEL_OK")
</pallas_src>

<mosaic_0001>
module attributes {stable_mosaic.version = 11 : i64} {
  func.func @another_net_kernel(%arg0: memref<25x120xf32, #tpu.memory_space<vmem>>, %arg1: memref<1x120xf32, #tpu.memory_space<vmem>>, %arg2: memref<28x28xf32, #tpu.memory_space<vmem>>, %arg3: memref<12x24xf32, #tpu.memory_space<vmem>>, %arg4: memref<12x24xf32, #tpu.memory_space<vmem>>, %arg5: memref<120x60xf32, #tpu.memory_space<vmem>>, %arg6: memref<120x60xf32, #tpu.memory_space<vmem>>, %arg7: memref<60x768xf32, #tpu.memory_space<vmem>>, %arg8: memref<1x64xf32, #tpu.memory_space<vmem>>, %arg9: memref<64x128xf32, #tpu.memory_space<vmem>>, %arg10: memref<1x128xf32, #tpu.memory_space<vmem>>, %arg11: memref<1x128xf32, #tpu.memory_space<vmem>>) attributes {dimension_semantics = [], scalar_prefetch = 0 : i64, scratch_operands = 0 : i64, tpu.core_type = #tpu.core_type<tc>} {
    %cst = arith.constant 0.000000e+00 : f32
    %0 = vector.broadcast %cst : f32 to vector<24x120xf32>
    %c0 = arith.constant 0 : index
    %c0_0 = arith.constant 0 : index
    %1 = vector.load %arg2[%c0, %c0_0] : memref<28x28xf32, #tpu.memory_space<vmem>>, vector<28x24xf32>
    %2 = tpu.concatenate %1, %1, %1, %1, %1 in 1 : vector<28x24xf32>, vector<28x24xf32>, vector<28x24xf32>, vector<28x24xf32>, vector<28x24xf32> -> vector<28x120xf32>
    %c0_1 = arith.constant 0 : index
    %c0_2 = arith.constant 0 : index
    %3 = vector.load %arg0[%c0_1, %c0_2] : memref<25x120xf32, #tpu.memory_space<vmem>>, vector<1x120xf32>
    %4 = vector.shape_cast %3 : vector<1x120xf32> to vector<120xf32>
    %5 = vector.extract_strided_slice %2 {offsets = [0, 0], sizes = [24, 120], strides = [1, 1]} : vector<28x120xf32> to vector<24x120xf32>
    %6 = vector.shape_cast %4 : vector<120xf32> to vector<1x120xf32>
    %7 = vector.broadcast %6 : vector<1x120xf32> to vector<24x120xf32>
    %8 = arith.mulf %7, %5 : vector<24x120xf32>
    %9 = arith.addf %0, %8 : vector<24x120xf32>
    %c5 = arith.constant 5 : index
    %c0_3 = arith.constant 0 : index
    %10 = vector.load %arg0[%c5, %c0_3] : memref<25x120xf32, #tpu.memory_space<vmem>>, vector<1x120xf32>
    %11 = vector.shape_cast %10 : vector<1x120xf32> to vector<120xf32>
    %12 = vector.extract_strided_slice %2 {offsets = [1, 0], sizes = [24, 120], strides = [1, 1]} : vector<28x120xf32> to vector<24x120xf32>
    %13 = vector.shape_cast %11 : vector<120xf32> to vector<1x120xf32>
    %14 = vector.broadcast %13 : vector<1x120xf32> to vector<24x120xf32>
    %15 = arith.mulf %14, %12 : vector<24x120xf32>
    %16 = arith.addf %9, %15 : vector<24x120xf32>
    %c10 = arith.constant 10 : index
    %c0_4 = arith.constant 0 : index
    %17 = vector.load %arg0[%c10, %c0_4] : memref<25x120xf32, #tpu.memory_space<vmem>>, vector<1x120xf32>
    %18 = vector.shape_cast %17 : vector<1x120xf32> to vector<120xf32>
    %19 = vector.extract_strided_slice %2 {offsets = [2, 0], sizes = [24, 120], strides = [1, 1]} : vector<28x120xf32> to vector<24x120xf32>
    %20 = vector.shape_cast %18 : vector<120xf32> to vector<1x120xf32>
    %21 = vector.broadcast %20 : vector<1x120xf32> to vector<24x120xf32>
    %22 = arith.mulf %21, %19 : vector<24x120xf32>
    %23 = arith.addf %16, %22 : vector<24x120xf32>
    %c15 = arith.constant 15 : index
    %c0_5 = arith.constant 0 : index
    %24 = vector.load %arg0[%c15, %c0_5] : memref<25x120xf32, #tpu.memory_space<vmem>>, vector<1x120xf32>
    %25 = vector.shape_cast %24 : vector<1x120xf32> to vector<120xf32>
    %26 = vector.extract_strided_slice %2 {offsets = [3, 0], sizes = [24, 120], strides = [1, 1]} : vector<28x120xf32> to vector<24x120xf32>
    %27 = vector.shape_cast %25 : vector<120xf32> to vector<1x120xf32>
    %28 = vector.broadcast %27 : vector<1x120xf32> to vector<24x120xf32>
    %29 = arith.mulf %28, %26 : vector<24x120xf32>
    %30 = arith.addf %23, %29 : vector<24x120xf32>
    %c20 = arith.constant 20 : index
    %c0_6 = arith.constant 0 : index
    %31 = vector.load %arg0[%c20, %c0_6] : memref<25x120xf32, #tpu.memory_space<vmem>>, vector<1x120xf32>
    %32 = vector.shape_cast %31 : vector<1x120xf32> to vector<120xf32>
    %33 = vector.extract_strided_slice %2 {offsets = [4, 0], sizes = [24, 120], strides = [1, 1]} : vector<28x120xf32> to vector<24x120xf32>
    %34 = vector.shape_cast %32 : vector<120xf32> to vector<1x120xf32>
    %35 = vector.broadcast %34 : vector<1x120xf32> to vector<24x120xf32>
    %36 = arith.mulf %35, %33 : vector<24x120xf32>
    %37 = arith.addf %30, %36 : vector<24x120xf32>
    %c0_7 = arith.constant 0 : index
    %c1 = arith.constant 1 : index
    %38 = vector.load %arg2[%c0_7, %c1] : memref<28x28xf32, #tpu.memory_space<vmem>>, vector<28x24xf32>
    %39 = tpu.concatenate %38, %38, %38, %38, %38 in 1 : vector<28x24xf32>, vector<28x24xf32>, vector<28x24xf32>, vector<28x24xf32>, vector<28x24xf32> -> vector<28x120xf32>
    %c1_8 = arith.constant 1 : index
    %c0_9 = arith.constant 0 : index
    %40 = vector.load %arg0[%c1_8, %c0_9] : memref<25x120xf32, #tpu.memory_space<vmem>>, vector<1x120xf32>
    %41 = vector.shape_cast %40 : vector<1x120xf32> to vector<120xf32>
    %42 = vector.extract_strided_slice %39 {offsets = [0, 0], sizes = [24, 120], strides = [1, 1]} : vector<28x120xf32> to vector<24x120xf32>
    %43 = vector.shape_cast %41 : vector<120xf32> to vector<1x120xf32>
    %44 = vector.broadcast %43 : vector<1x120xf32> to vector<24x120xf32>
    %45 = arith.mulf %44, %42 : vector<24x120xf32>
    %46 = arith.addf %37, %45 : vector<24x120xf32>
    %c6 = arith.constant 6 : index
    %c0_10 = arith.constant 0 : index
    %47 = vector.load %arg0[%c6, %c0_10] : memref<25x120xf32, #tpu.memory_space<vmem>>, vector<1x120xf32>
    %48 = vector.shape_cast %47 : vector<1x120xf32> to vector<120xf32>
    %49 = vector.extract_strided_slice %39 {offsets = [1, 0], sizes = [24, 120], strides = [1, 1]} : vector<28x120xf32> to vector<24x120xf32>
    %50 = vector.shape_cast %48 : vector<120xf32> to vector<1x120xf32>
    %51 = vector.broadcast %50 : vector<1x120xf32> to vector<24x120xf32>
    %52 = arith.mulf %51, %49 : vector<24x120xf32>
    %53 = arith.addf %46, %52 : vector<24x120xf32>
    %c11 = arith.constant 11 : index
    %c0_11 = arith.constant 0 : index
    %54 = vector.load %arg0[%c11, %c0_11] : memref<25x120xf32, #tpu.memory_space<vmem>>, vector<1x120xf32>
    %55 = vector.shape_cast %54 : vector<1x120xf32> to vector<120xf32>
    %56 = vector.extract_strided_slice %39 {offsets = [2, 0], sizes = [24, 120], strides = [1, 1]} : vector<28x120xf32> to vector<24x120xf32>
    %57 = vector.shape_cast %55 : vector<120xf32> to vector<1x120xf32>
    %58 = vector.broadcast %57 : vector<1x120xf32> to vector<24x120xf32>
    %59 = arith.mulf %58, %56 : vector<24x120xf32>
    %60 = arith.addf %53, %59 : vector<24x120xf32>
    %c16 = arith.constant 16 : index
    %c0_12 = arith.constant 0 : index
    %61 = vector.load %arg0[%c16, %c0_12] : memref<25x120xf32, #tpu.memory_space<vmem>>, vector<1x120xf32>
    %62 = vector.shape_cast %61 : vector<1x120xf32> to vector<120xf32>
    %63 = vector.extract_strided_slice %39 {offsets = [3, 0], sizes = [24, 120], strides = [1, 1]} : vector<28x120xf32> to vector<24x120xf32>
    %64 = vector.shape_cast %62 : vector<120xf32> to vector<1x120xf32>
    %65 = vector.broadcast %64 : vector<1x120xf32> to vector<24x120xf32>
    %66 = arith.mulf %65, %63 : vector<24x120xf32>
    %67 = arith.addf %60, %66 : vector<24x120xf32>
    %c21 = arith.constant 21 : index
    %c0_13 = arith.constant 0 : index
    %68 = vector.load %arg0[%c21, %c0_13] : memref<25x120xf32, #tpu.memory_space<vmem>>, vector<1x120xf32>
    %69 = vector.shape_cast %68 : vector<1x120xf32> to vector<120xf32>
    %70 = vector.extract_strided_slice %39 {offsets = [4, 0], sizes = [24, 120], strides = [1, 1]} : vector<28x120xf32> to vector<24x120xf32>
    %71 = vector.shape_cast %69 : vector<120xf32> to vector<1x120xf32>
    %72 = vector.broadcast %71 : vector<1x120xf32> to vector<24x120xf32>
    %73 = arith.mulf %72, %70 : vector<24x120xf32>
    %74 = arith.addf %67, %73 : vector<24x120xf32>
    %c0_14 = arith.constant 0 : index
    %c2 = arith.constant 2 : index
    %75 = vector.load %arg2[%c0_14, %c2] : memref<28x28xf32, #tpu.memory_space<vmem>>, vector<28x24xf32>
    %76 = tpu.concatenate %75, %75, %75, %75, %75 in 1 : vector<28x24xf32>, vector<28x24xf32>, vector<28x24xf32>, vector<28x24xf32>, vector<28x24xf32> -> vector<28x120xf32>
    %c2_15 = arith.constant 2 : index
    %c0_16 = arith.constant 0 : index
    %77 = vector.load %arg0[%c2_15, %c0_16] : memref<25x120xf32, #tpu.memory_space<vmem>>, vector<1x120xf32>
    %78 = vector.shape_cast %77 : vector<1x120xf32> to vector<120xf32>
    %79 = vector.extract_strided_slice %76 {offsets = [0, 0], sizes = [24, 120], strides = [1, 1]} : vector<28x120xf32> to vector<24x120xf32>
    %80 = vector.shape_cast %78 : vector<120xf32> to vector<1x120xf32>
    %81 = vector.broadcast %80 : vector<1x120xf32> to vector<24x120xf32>
    %82 = arith.mulf %81, %79 : vector<24x120xf32>
    %83 = arith.addf %74, %82 : vector<24x120xf32>
    %c7 = arith.constant 7 : index
    %c0_17 = arith.constant 0 : index
    %84 = vector.load %arg0[%c7, %c0_17] : memref<25x120xf32, #tpu.memory_space<vmem>>, vector<1x120xf32>
    %85 = vector.shape_cast %84 : vector<1x120xf32> to vector<120xf32>
    %86 = vector.extract_strided_slice %76 {offsets = [1, 0], sizes = [24, 120], strides = [1, 1]} : vector<28x120xf32> to vector<24x120xf32>
    %87 = vector.shape_cast %85 : vector<120xf32> to vector<1x120xf32>
    %88 = vector.broadcast %87 : vector<1x120xf32> to vector<24x120xf32>
    %89 = arith.mulf %88, %86 : vector<24x120xf32>
    %90 = arith.addf %83, %89 : vector<24x120xf32>
    %c12 = arith.constant 12 : index
    %c0_18 = arith.constant 0 : index
    %91 = vector.load %arg0[%c12, %c0_18] : memref<25x120xf32, #tpu.memory_space<vmem>>, vector<1x120xf32>
    %92 = vector.shape_cast %91 : vector<1x120xf32> to vector<120xf32>
    %93 = vector.extract_strided_slice %76 {offsets = [2, 0], sizes = [24, 120], strides = [1, 1]} : vector<28x120xf32> to vector<24x120xf32>
    %94 = vector.shape_cast %92 : vector<120xf32> to vector<1x120xf32>
    %95 = vector.broadcast %94 : vector<1x120xf32> to vector<24x120xf32>
    %96 = arith.mulf %95, %93 : vector<24x120xf32>
    %97 = arith.addf %90, %96 : vector<24x120xf32>
    %c17 = arith.constant 17 : index
    %c0_19 = arith.constant 0 : index
    %98 = vector.load %arg0[%c17, %c0_19] : memref<25x120xf32, #tpu.memory_space<vmem>>, vector<1x120xf32>
    %99 = vector.shape_cast %98 : vector<1x120xf32> to vector<120xf32>
    %100 = vector.extract_strided_slice %76 {offsets = [3, 0], sizes = [24, 120], strides = [1, 1]} : vector<28x120xf32> to vector<24x120xf32>
    %101 = vector.shape_cast %99 : vector<120xf32> to vector<1x120xf32>
    %102 = vector.broadcast %101 : vector<1x120xf32> to vector<24x120xf32>
    %103 = arith.mulf %102, %100 : vector<24x120xf32>
    %104 = arith.addf %97, %103 : vector<24x120xf32>
    %c22 = arith.constant 22 : index
    %c0_20 = arith.constant 0 : index
    %105 = vector.load %arg0[%c22, %c0_20] : memref<25x120xf32, #tpu.memory_space<vmem>>, vector<1x120xf32>
    %106 = vector.shape_cast %105 : vector<1x120xf32> to vector<120xf32>
    %107 = vector.extract_strided_slice %76 {offsets = [4, 0], sizes = [24, 120], strides = [1, 1]} : vector<28x120xf32> to vector<24x120xf32>
    %108 = vector.shape_cast %106 : vector<120xf32> to vector<1x120xf32>
    %109 = vector.broadcast %108 : vector<1x120xf32> to vector<24x120xf32>
    %110 = arith.mulf %109, %107 : vector<24x120xf32>
    %111 = arith.addf %104, %110 : vector<24x120xf32>
    %c0_21 = arith.constant 0 : index
    %c3 = arith.constant 3 : index
    %112 = vector.load %arg2[%c0_21, %c3] : memref<28x28xf32, #tpu.memory_space<vmem>>, vector<28x24xf32>
    %113 = tpu.concatenate %112, %112, %112, %112, %112 in 1 : vector<28x24xf32>, vector<28x24xf32>, vector<28x24xf32>, vector<28x24xf32>, vector<28x24xf32> -> vector<28x120xf32>
    %c3_22 = arith.constant 3 : index
    %c0_23 = arith.constant 0 : index
    %114 = vector.load %arg0[%c3_22, %c0_23] : memref<25x120xf32, #tpu.memory_space<vmem>>, vector<1x120xf32>
    %115 = vector.shape_cast %114 : vector<1x120xf32> to vector<120xf32>
    %116 = vector.extract_strided_slice %113 {offsets = [0, 0], sizes = [24, 120], strides = [1, 1]} : vector<28x120xf32> to vector<24x120xf32>
    %117 = vector.shape_cast %115 : vector<120xf32> to vector<1x120xf32>
    %118 = vector.broadcast %117 : vector<1x120xf32> to vector<24x120xf32>
    %119 = arith.mulf %118, %116 : vector<24x120xf32>
    %120 = arith.addf %111, %119 : vector<24x120xf32>
    %c8 = arith.constant 8 : index
    %c0_24 = arith.constant 0 : index
    %121 = vector.load %arg0[%c8, %c0_24] : memref<25x120xf32, #tpu.memory_space<vmem>>, vector<1x120xf32>
    %122 = vector.shape_cast %121 : vector<1x120xf32> to vector<120xf32>
    %123 = vector.extract_strided_slice %113 {offsets = [1, 0], sizes = [24, 120], strides = [1, 1]} : vector<28x120xf32> to vector<24x120xf32>
    %124 = vector.shape_cast %122 : vector<120xf32> to vector<1x120xf32>
    %125 = vector.broadcast %124 : vector<1x120xf32> to vector<24x120xf32>
    %126 = arith.mulf %125, %123 : vector<24x120xf32>
    %127 = arith.addf %120, %126 : vector<24x120xf32>
    %c13 = arith.constant 13 : index
    %c0_25 = arith.constant 0 : index
    %128 = vector.load %arg0[%c13, %c0_25] : memref<25x120xf32, #tpu.memory_space<vmem>>, vector<1x120xf32>
    %129 = vector.shape_cast %128 : vector<1x120xf32> to vector<120xf32>
    %130 = vector.extract_strided_slice %113 {offsets = [2, 0], sizes = [24, 120], strides = [1, 1]} : vector<28x120xf32> to vector<24x120xf32>
    %131 = vector.shape_cast %129 : vector<120xf32> to vector<1x120xf32>
    %132 = vector.broadcast %131 : vector<1x120xf32> to vector<24x120xf32>
    %133 = arith.mulf %132, %130 : vector<24x120xf32>
    %134 = arith.addf %127, %133 : vector<24x120xf32>
    %c18 = arith.constant 18 : index
    %c0_26 = arith.constant 0 : index
    %135 = vector.load %arg0[%c18, %c0_26] : memref<25x120xf32, #tpu.memory_space<vmem>>, vector<1x120xf32>
    %136 = vector.shape_cast %135 : vector<1x120xf32> to vector<120xf32>
    %137 = vector.extract_strided_slice %113 {offsets = [3, 0], sizes = [24, 120], strides = [1, 1]} : vector<28x120xf32> to vector<24x120xf32>
    %138 = vector.shape_cast %136 : vector<120xf32> to vector<1x120xf32>
    %139 = vector.broadcast %138 : vector<1x120xf32> to vector<24x120xf32>
    %140 = arith.mulf %139, %137 : vector<24x120xf32>
    %141 = arith.addf %134, %140 : vector<24x120xf32>
    %c23 = arith.constant 23 : index
    %c0_27 = arith.constant 0 : index
    %142 = vector.load %arg0[%c23, %c0_27] : memref<25x120xf32, #tpu.memory_space<vmem>>, vector<1x120xf32>
    %143 = vector.shape_cast %142 : vector<1x120xf32> to vector<120xf32>
    %144 = vector.extract_strided_slice %113 {offsets = [4, 0], sizes = [24, 120], strides = [1, 1]} : vector<28x120xf32> to vector<24x120xf32>
    %145 = vector.shape_cast %143 : vector<120xf32> to vector<1x120xf32>
    %146 = vector.broadcast %145 : vector<1x120xf32> to vector<24x120xf32>
    %147 = arith.mulf %146, %144 : vector<24x120xf32>
    %148 = arith.addf %141, %147 : vector<24x120xf32>
    %c0_28 = arith.constant 0 : index
    %c4 = arith.constant 4 : index
    %149 = vector.load %arg2[%c0_28, %c4] : memref<28x28xf32, #tpu.memory_space<vmem>>, vector<28x24xf32>
    %150 = tpu.concatenate %149, %149, %149, %149, %149 in 1 : vector<28x24xf32>, vector<28x24xf32>, vector<28x24xf32>, vector<28x24xf32>, vector<28x24xf32> -> vector<28x120xf32>
    %c4_29 = arith.constant 4 : index
    %c0_30 = arith.constant 0 : index
    %151 = vector.load %arg0[%c4_29, %c0_30] : memref<25x120xf32, #tpu.memory_space<vmem>>, vector<1x120xf32>
    %152 = vector.shape_cast %151 : vector<1x120xf32> to vector<120xf32>
    %153 = vector.extract_strided_slice %150 {offsets = [0, 0], sizes = [24, 120], strides = [1, 1]} : vector<28x120xf32> to vector<24x120xf32>
    %154 = vector.shape_cast %152 : vector<120xf32> to vector<1x120xf32>
    %155 = vector.broadcast %154 : vector<1x120xf32> to vector<24x120xf32>
    %156 = arith.mulf %155, %153 : vector<24x120xf32>
    %157 = arith.addf %148, %156 : vector<24x120xf32>
    %c9 = arith.constant 9 : index
    %c0_31 = arith.constant 0 : index
    %158 = vector.load %arg0[%c9, %c0_31] : memref<25x120xf32, #tpu.memory_space<vmem>>, vector<1x120xf32>
    %159 = vector.shape_cast %158 : vector<1x120xf32> to vector<120xf32>
    %160 = vector.extract_strided_slice %150 {offsets = [1, 0], sizes = [24, 120], strides = [1, 1]} : vector<28x120xf32> to vector<24x120xf32>
    %161 = vector.shape_cast %159 : vector<120xf32> to vector<1x120xf32>
    %162 = vector.broadcast %161 : vector<1x120xf32> to vector<24x120xf32>
    %163 = arith.mulf %162, %160 : vector<24x120xf32>
    %164 = arith.addf %157, %163 : vector<24x120xf32>
    %c14 = arith.constant 14 : index
    %c0_32 = arith.constant 0 : index
    %165 = vector.load %arg0[%c14, %c0_32] : memref<25x120xf32, #tpu.memory_space<vmem>>, vector<1x120xf32>
    %166 = vector.shape_cast %165 : vector<1x120xf32> to vector<120xf32>
    %167 = vector.extract_strided_slice %150 {offsets = [2, 0], sizes = [24, 120], strides = [1, 1]} : vector<28x120xf32> to vector<24x120xf32>
    %168 = vector.shape_cast %166 : vector<120xf32> to vector<1x120xf32>
    %169 = vector.broadcast %168 : vector<1x120xf32> to vector<24x120xf32>
    %170 = arith.mulf %169, %167 : vector<24x120xf32>
    %171 = arith.addf %164, %170 : vector<24x120xf32>
    %c19 = arith.constant 19 : index
    %c0_33 = arith.constant 0 : index
    %172 = vector.load %arg0[%c19, %c0_33] : memref<25x120xf32, #tpu.memory_space<vmem>>, vector<1x120xf32>
    %173 = vector.shape_cast %172 : vector<1x120xf32> to vector<120xf32>
    %174 = vector.extract_strided_slice %150 {offsets = [3, 0], sizes = [24, 120], strides = [1, 1]} : vector<28x120xf32> to vector<24x120xf32>
    %175 = vector.shape_cast %173 : vector<120xf32> to vector<1x120xf32>
    %176 = vector.broadcast %175 : vector<1x120xf32> to vector<24x120xf32>
    %177 = arith.mulf %176, %174 : vector<24x120xf32>
    %178 = arith.addf %171, %177 : vector<24x120xf32>
    %c24 = arith.constant 24 : index
    %c0_34 = arith.constant 0 : index
    %179 = vector.load %arg0[%c24, %c0_34] : memref<25x120xf32, #tpu.memory_space<vmem>>, vector<1x120xf32>
    %180 = vector.shape_cast %179 : vector<1x120xf32> to vector<120xf32>
    %181 = vector.extract_strided_slice %150 {offsets = [4, 0], sizes = [24, 120], strides = [1, 1]} : vector<28x120xf32> to vector<24x120xf32>
    %182 = vector.shape_cast %180 : vector<120xf32> to vector<1x120xf32>
    %183 = vector.broadcast %182 : vector<1x120xf32> to vector<24x120xf32>
    %184 = arith.mulf %183, %181 : vector<24x120xf32>
    %185 = arith.addf %178, %184 : vector<24x120xf32>
    %c0_35 = arith.constant 0 : index
    %c0_36 = arith.constant 0 : index
    %186 = vector.load %arg1[%c0_35, %c0_36] : memref<1x120xf32, #tpu.memory_space<vmem>>, vector<1x120xf32>
    %187 = vector.broadcast %186 : vector<1x120xf32> to vector<24x120xf32>
    %188 = arith.addf %185, %187 : vector<24x120xf32>
    %189 = math.tanh %188 : vector<24x120xf32>
    %c0_37 = arith.constant 0 : index
    %c0_38 = arith.constant 0 : index
    %190 = vector.load %arg3[%c0_37, %c0_38] : memref<12x24xf32, #tpu.memory_space<vmem>>, vector<12x24xf32>
    %cst_39 = arith.constant dense<0.000000e+00> : vector<12x120xf32>
    %191 = tpu.matmul %190, %189, %cst_39 {dimension_numbers = #tpu.dot_dimension_numbers<[1], [0], [0], [1], [0, 0, 1, 1], [], []>} : vector<12x24xf32>, vector<24x120xf32>, vector<12x120xf32> -> vector<12x120xf32>
    %c0_40 = arith.constant 0 : index
    %c0_41 = arith.constant 0 : index
    %192 = vector.load %arg4[%c0_40, %c0_41] : memref<12x24xf32, #tpu.memory_space<vmem>>, vector<12x24xf32>
    %cst_42 = arith.constant dense<0.000000e+00> : vector<12x120xf32>
    %193 = tpu.matmul %192, %189, %cst_42 {dimension_numbers = #tpu.dot_dimension_numbers<[1], [0], [0], [1], [0, 0, 1, 1], [], []>} : vector<12x24xf32>, vector<24x120xf32>, vector<12x120xf32> -> vector<12x120xf32>
    %194 = arith.maximumf %191, %193 : vector<12x120xf32>
    %c0_43 = arith.constant 0 : index
    %c0_44 = arith.constant 0 : index
    %195 = vector.load %arg5[%c0_43, %c0_44] : memref<120x60xf32, #tpu.memory_space<vmem>>, vector<120x60xf32>
    %cst_45 = arith.constant dense<0.000000e+00> : vector<12x60xf32>
    %196 = tpu.matmul %194, %195, %cst_45 {dimension_numbers = #tpu.dot_dimension_numbers<[1], [0], [0], [1], [0, 0, 1, 1], [], []>} : vector<12x120xf32>, vector<120x60xf32>, vector<12x60xf32> -> vector<12x60xf32>
    %c0_46 = arith.constant 0 : index
    %c0_47 = arith.constant 0 : index
    %197 = vector.load %arg6[%c0_46, %c0_47] : memref<120x60xf32, #tpu.memory_space<vmem>>, vector<120x60xf32>
    %cst_48 = arith.constant dense<0.000000e+00> : vector<12x60xf32>
    %198 = tpu.matmul %194, %197, %cst_48 {dimension_numbers = #tpu.dot_dimension_numbers<[1], [0], [0], [1], [0, 0, 1, 1], [], []>} : vector<12x120xf32>, vector<120x60xf32>, vector<12x60xf32> -> vector<12x60xf32>
    %199 = arith.maximumf %196, %198 : vector<12x60xf32>
    %c0_49 = arith.constant 0 : index
    %c0_50 = arith.constant 0 : index
    %200 = vector.load %arg7[%c0_49, %c0_50] : memref<60x768xf32, #tpu.memory_space<vmem>>, vector<60x768xf32>
    %cst_51 = arith.constant dense<0.000000e+00> : vector<12x768xf32>
    %201 = tpu.matmul %199, %200, %cst_51 {dimension_numbers = #tpu.dot_dimension_numbers<[1], [0], [0], [1], [0, 0, 1, 1], [], []>} : vector<12x60xf32>, vector<60x768xf32>, vector<12x768xf32> -> vector<12x768xf32>
    %cst_52 = arith.constant 0.000000e+00 : f32
    %202 = vector.broadcast %cst_52 : f32 to vector<1x128xf32>
    %cst_53 = arith.constant 0.000000e+00 : f32
    %203 = vector.broadcast %cst_53 : f32 to vector<1x128xf32>
    %204 = vector.extract_strided_slice %201 {offsets = [0, 0], sizes = [1, 128], strides = [1, 1]} : vector<12x768xf32> to vector<1x128xf32>
    %205 = arith.addf %202, %204 : vector<1x128xf32>
    %206 = vector.extract_strided_slice %201 {offsets = [1, 0], sizes = [1, 128], strides = [1, 1]} : vector<12x768xf32> to vector<1x128xf32>
    %207 = arith.addf %203, %206 : vector<1x128xf32>
    %208 = vector.extract_strided_slice %201 {offsets = [2, 128], sizes = [1, 128], strides = [1, 1]} : vector<12x768xf32> to vector<1x128xf32>
    %209 = arith.addf %205, %208 : vector<1x128xf32>
    %210 = vector.extract_strided_slice %201 {offsets = [3, 128], sizes = [1, 128], strides = [1, 1]} : vector<12x768xf32> to vector<1x128xf32>
    %211 = arith.addf %207, %210 : vector<1x128xf32>
    %212 = vector.extract_strided_slice %201 {offsets = [4, 256], sizes = [1, 128], strides = [1, 1]} : vector<12x768xf32> to vector<1x128xf32>
    %213 = arith.addf %209, %212 : vector<1x128xf32>
    %214 = vector.extract_strided_slice %201 {offsets = [5, 256], sizes = [1, 128], strides = [1, 1]} : vector<12x768xf32> to vector<1x128xf32>
    %215 = arith.addf %211, %214 : vector<1x128xf32>
    %216 = vector.extract_strided_slice %201 {offsets = [6, 384], sizes = [1, 128], strides = [1, 1]} : vector<12x768xf32> to vector<1x128xf32>
    %217 = arith.addf %213, %216 : vector<1x128xf32>
    %218 = vector.extract_strided_slice %201 {offsets = [7, 384], sizes = [1, 128], strides = [1, 1]} : vector<12x768xf32> to vector<1x128xf32>
    %219 = arith.addf %215, %218 : vector<1x128xf32>
    %220 = vector.extract_strided_slice %201 {offsets = [8, 512], sizes = [1, 128], strides = [1, 1]} : vector<12x768xf32> to vector<1x128xf32>
    %221 = arith.addf %217, %220 : vector<1x128xf32>
    %222 = vector.extract_strided_slice %201 {offsets = [9, 512], sizes = [1, 128], strides = [1, 1]} : vector<12x768xf32> to vector<1x128xf32>
    %223 = arith.addf %219, %222 : vector<1x128xf32>
    %224 = vector.extract_strided_slice %201 {offsets = [10, 640], sizes = [1, 128], strides = [1, 1]} : vector<12x768xf32> to vector<1x128xf32>
    %225 = arith.addf %221, %224 : vector<1x128xf32>
    %226 = vector.extract_strided_slice %201 {offsets = [11, 640], sizes = [1, 128], strides = [1, 1]} : vector<12x768xf32> to vector<1x128xf32>
    %227 = arith.addf %223, %226 : vector<1x128xf32>
    %228 = vector.extract_strided_slice %225 {offsets = [0, 0], sizes = [1, 64], strides = [1, 1]} : vector<1x128xf32> to vector<1x64xf32>
    %229 = vector.extract_strided_slice %227 {offsets = [0, 64], sizes = [1, 64], strides = [1, 1]} : vector<1x128xf32> to vector<1x64xf32>
    %230 = arith.addf %228, %229 : vector<1x64xf32>
    %c0_54 = arith.constant 0 : index
    %c0_55 = arith.constant 0 : index
    %231 = vector.load %arg8[%c0_54, %c0_55] : memref<1x64xf32, #tpu.memory_space<vmem>>, vector<1x64xf32>
    %232 = arith.addf %230, %231 : vector<1x64xf32>
    %233 = math.tanh %232 : vector<1x64xf32>
    %c0_56 = arith.constant 0 : index
    %c0_57 = arith.constant 0 : index
    %234 = vector.load %arg9[%c0_56, %c0_57] : memref<64x128xf32, #tpu.memory_space<vmem>>, vector<64x128xf32>
    %cst_58 = arith.constant dense<0.000000e+00> : vector<1x128xf32>
    %235 = tpu.matmul %233, %234, %cst_58 {dimension_numbers = #tpu.dot_dimension_numbers<[1], [0], [0], [1], [0, 0, 1, 1], [], []>} : vector<1x64xf32>, vector<64x128xf32>, vector<1x128xf32> -> vector<1x128xf32>
    %c0_59 = arith.constant 0 : index
    %c0_60 = arith.constant 0 : index
    %236 = vector.load %arg10[%c0_59, %c0_60] : memref<1x128xf32, #tpu.memory_space<vmem>>, vector<1x128xf32>
    %237 = arith.addf %235, %236 : vector<1x128xf32>
    %238 = tpu.iota {dimensions = array<i32: 1>} : vector<1x128xi32>
    %c10_i32 = arith.constant 10 : i32
    %239 = vector.broadcast %c10_i32 : i32 to vector<1x128xi32>
    %240 = arith.cmpi slt, %238, %239 : vector<1x128xi32>
    %cst_61 = arith.constant -1.000000e+30 : f32
    %241 = vector.broadcast %cst_61 : f32 to vector<1x128xf32>
    %242 = arith.select %240, %237, %241 : vector<1x128xi1>, vector<1x128xf32>
    %cst_62 = arith.constant dense<0xFF800000> : vector<1xf32>
    %243 = vector.multi_reduction <maximumf>, %242, %cst_62 [1] : vector<1x128xf32> to vector<1xf32>
    %244 = vector.shape_cast %243 : vector<1xf32> to vector<1x1xf32>
    %245 = vector.broadcast %244 : vector<1x1xf32> to vector<1x128xf32>
    %246 = arith.subf %242, %245 : vector<1x128xf32>
    %247 = math.exp %246 : vector<1x128xf32>
    %cst_63 = arith.constant dense<0.000000e+00> : vector<1xf32>
    %248 = vector.multi_reduction <add>, %247, %cst_63 [1] : vector<1x128xf32> to vector<1xf32>
    %249 = vector.shape_cast %248 : vector<1xf32> to vector<1x1xf32>
    %250 = tpu.reciprocal %249 : vector<1x1xf32> -> vector<1x1xf32>
    %251 = vector.broadcast %250 : vector<1x1xf32> to vector<1x128xf32>
    %252 = arith.mulf %247, %251 : vector<1x128xf32>
    %c0_64 = arith.constant 0 : index
    %c0_65 = arith.constant 0 : index
    %253 = vector.load %arg11[%c0_64, %c0_65] : memref<1x128xf32, #tpu.memory_space<vmem>>, vector<1x128xf32>
    tpu.vector_store %arg11[%c0_64, %c0_65], %252 {strides = array<i32>} : memref<1x128xf32, #tpu.memory_space<vmem>>, vector<1x128xf32>,
    return
  }
}

</mosaic_0001>

<bundles_post_ra>
// kernel: another_net_forward.1
= control target key start
LH: loop header
LB: loop body
LE: loop exit
PB: predicated region body
PF: predicated region fallthrough
CT: control target
= control target key end

     0   :  { %16 = vsyncpa [#allocation3], 0  ;;  %s3045_s0 = inlined_call_operand.vmem [shape: f32[25,120], index: 0, kind: input, shape index: {}]   ;;  %s3046_s1 = inlined_call_operand.vmem [shape: f32[1,120], index: 1, kind: input, shape index: {}]   ;;  %s3047_s2 = inlined_call_operand.vmem [shape: f32[28,28], index: 2, kind: input, shape index: {}]   ;;  %s3048_s3 = inlined_call_operand.vmem [shape: f32[12,24], index: 3, kind: input, shape index: {}]   ;;  %s3049_s4 = inlined_call_operand.hbm [shape: f32[12,24], index: 4, kind: input, shape index: {}]   ;;  %s3050_s5 = inlined_call_operand.vmem [shape: f32[120,60], index: 5, kind: input, shape index: {}]   ;;  %s3051_s6 = inlined_call_operand.vmem [shape: f32[120,60], index: 6, kind: input, shape index: {}]   ;;  %s3052_s7 = inlined_call_operand.vmem [shape: f32[60,768], index: 7, kind: input, shape index: {}]   ;;  %s3053_s8 = inlined_call_operand.vmem [shape: f32[1,64], index: 8, kind: input, shape index: {}]   ;;  %s3054_s9 = inlined_call_operand.hbm [shape: f32[64,128], index: 9, kind: input, shape index: {}]   ;;  %s3055_s10 = inlined_call_operand.vmem [shape: f32[1,128], index: 10, kind: input, shape index: {}]   ;;  %s3056_s11 = inlined_call_operand.vmem [shape: f32[1,128], index: 11, kind: output, shape index: {}]  }
   0x1   :  { %17 = vsyncpa [#allocation5], 0  ;;  %s2116_s17 = smov [#allocation2]  }
   0x2   :  { %s31_s18 = sshll.u32 %s2116_s17, 4  ;;  %s32_s18 = int_to_ptr.vmem [resolvable:$true] %s31_s18 }
   0x3   :  { %s2080_s19 = scalar_lea.vmem %s32_s18, 256  ;;  %p2085_p1 = scmp.lt.s32.totalorder %s32_s18, %s32_s18 }
   0x4   :  { %p2081_p0 = scmp.ne.s32.totalorder %s32_s18, %s2080_s19  ;;  %p2086_p2 = scmp.lt.s32.totalorder %s2080_s19, %s2080_s19 }
   0x6   :  { %p2087_p3 = por %p2086_p2, %p2085_p1 }
   0x8   :  { %p2088_p4 = pnand %p2087_p3, %p2081_p0 }
   0xa   :  { %2091 = shalt.err (!%p2088_p4)
}
   0xb   :  { %s2117_s20 = smov 128   ;;  %s2118_s21 = smov 8  }
   0xc   :  { %37 = dma.hbm_to_vmem [thread:$0]  %s3049_s4, 256, %s32_s18, [#allocation3], %s2117_s20, %s2117_s20, %s2118_s21  }
   0xd   :  { %s2119_s24 = smov [#allocation4]  }
   0xe   :  { %s51_s25 = sshll.u32 %s2119_s24, 4  ;;  %s52_s25 = int_to_ptr.vmem [resolvable:$true] %s51_s25 }
   0xf   :  { %s2100_s26 = scalar_lea.vmem %s52_s25, 1024  ;;  %p2105_p6 = scmp.lt.s32.totalorder %s52_s25, %s52_s25 }
  0x10   :  { %p2101_p5 = scmp.ne.s32.totalorder %s52_s25, %s2100_s26  ;;  %p2106_p7 = scmp.lt.s32.totalorder %s2100_s26, %s2100_s26 }
  0x12   :  { %p2107_p8 = por %p2106_p7, %p2105_p6 }
  0x14   :  { %p2108_p9 = pnand %p2107_p8, %p2101_p5 }
  0x16   :  { %2111 = shalt.err (!%p2108_p9)
}
  0x17   :  { %57 = dma.hbm_to_vmem [thread:$0]  %s3054_s9, 1024, %s52_s25, [#allocation5], %s2117_s20, %s2117_s20, %s2118_s21  }
  0x18   :  { %2112 = dma.done.wait [#allocation3], 256  }
  0x19   :  { %2113 = vsyncadd [#allocation3], 4294967040 }
  0x1a   :  { %2114 = dma.done.wait [#allocation5], 1024  }
  0x1b   :  { %2115 = vsyncadd [#allocation5], 4294966272  ;;  %v2216_v0 = vld [vmem:[%s3047_s2 + $0x10] sm:$0xff]  ;;  %s2120_s30 = smov 48   ;;  %s2121_s12 = smov 24   ;;  %v2230_v2 = vld [vmem:[%s3047_s2 + $0x8] sm:$0xff] }
  0x1c   :  { %90 = vrot.lane.b32.xlu1 %v2216_v0, %s2120_s30  ;;  %78 = vrot.lane.b32.xlu0 %v2216_v0, %s2121_s12  ;;  %v2223_v1 = vld [vmem:[%s3047_s2 + $0x18] sm:$0xf]  ;;  %s2122_s16 = smov 72   ;;  %s2123_s17 = smov 96   ;;  %v2241_v3 = vld [vmem:[%s3047_s2] sm:$0xff]  ;;  %vm122_vm0 = vcmask 195584  }
  0x1d   :  { %s2124_s20 = smov 127   ;;  %s2125_s21 = smov 23   ;;  %vm127_vm1 = vcmask 392192   ;;  %vm132_vm2 = vcmask 588800   ;;  %vm137_vm3 = vcmask 785408   ;;  %vm166_vm4 = vcmask 1046528  }
  0x1e   :  { %s2126_s2 = smov 47   ;;  %s2127_s22 = smov 71   ;;  %v2323_v20 = vld [vmem:[%s3045_s0 + $0x5] ss:$0 sm:$0xff]  ;;  %v2328_v21 = vld [vmem:[%s3045_s0 + $0xa] ss:$0 sm:$0xff] }
  0x1f   :  { %s2128_s23 = smov 95   ;;  %s2129_s24 = smov 126   ;;  %v2333_v22 = vld [vmem:[%s3045_s0 + $0xf] ss:$0 sm:$0xff]  ;;  %v2338_v23 = vld [vmem:[%s3045_s0 + $0x14] ss:$0 sm:$0xff] }
  0x20   :  { %92 = vrot.lane.b32.xlu1 %v2223_v1, %s2120_s30  ;;  %80 = vrot.lane.b32.xlu0 %v2223_v1, %s2121_s12  ;;  %s2130_s25 = smov 22   ;;  %s2131_s26 = smov 46   ;;  %vm193_vm5 = vcmask 1045504   ;;  %v2351_v32 = vld [vmem:[%s3045_s0] ss:$0 sm:$0xff]  ;;  %vm220_vm6 = vcmask 1044480  }
  0x21   :  { %s2132_s27 = smov 70   ;;  %s2133_s28 = smov 94   ;;  %vm247_vm7 = vcmask 1043456   ;;  %vm1221_vm8 = vcmask 982016   ;;  %vm1443_vm9 = vcmask 490496   ;;  %vm2145_vm10 = vmmov 0  }
  0x22   :  { %s2134_s29 = smov 125   ;;  %s2135_s4 = smov 21   ;;  %vm1729_vm11 = vcmask 523264   ;;  %vm1807_vm13 = vcmask 1040384  }
  0x23   :  { %s2142_s9 = smov 68   ;;  %s2143_s15 = smov 92  }
  0x24   :  { %102 = vrot.lane.b32.xlu1 %v2216_v0, %s2122_s16  ;;  %76 = vrot.lane.b32.xlu0 %v2230_v2, %s2121_s12 }
  0x28   :  { %88 = vrot.lane.b32.xlu1 %v2230_v2, %s2120_s30  ;;  %104 = vrot.lane.b32.xlu0 %v2223_v1, %s2122_s16 }
  0x2c   :  { %116 = vrot.lane.b32.xlu1 %v2223_v1, %s2123_s17  ;;  %114 = vrot.lane.b32.xlu0 %v2216_v0, %s2123_s17 }
  0x30   :  { %100 = vrot.lane.b32.xlu1 %v2230_v2, %s2122_s16  ;;  %74 = vrot.lane.b32.xlu0 %v2241_v3, %s2121_s12  ;;  %s2137_s12 = smov 69  }
  0x34   :  { %112 = vrot.lane.b32.xlu1 %v2230_v2, %s2123_s17  ;;  %86 = vrot.lane.b32.xlu0 %v2241_v3, %s2120_s30  ;;  %s2136_s30 = smov 45  }
  0x38   :  { %110 = vrot.lane.b32.xlu1 %v2241_v3, %s2123_s17  ;;  %98 = vrot.lane.b32.xlu0 %v2241_v3, %s2122_s16 }
  0x3c   :  { %267 = vrot.lane.b32.xlu1 %v2223_v1, %s2124_s20  ;;  %265 = vrot.lane.b32.xlu0 %v2216_v0, %s2124_s20 }
  0x40   :  { %279 = vrot.lane.b32.xlu1 %v2223_v1, %s2125_s21  ;;  %277 = vrot.lane.b32.xlu0 %v2216_v0, %s2125_s21 }
  0x44   :  { %291 = vrot.lane.b32.xlu1 %v2223_v1, %s2126_s2  ;;  %289 = vrot.lane.b32.xlu0 %v2216_v0, %s2126_s2 }
  0x48   :  { %275 = vrot.lane.b32.xlu1 %v2230_v2, %s2125_s21  ;;  %263 = vrot.lane.b32.xlu0 %v2230_v2, %s2124_s20 }
  0x4c   :  { %303 = vrot.lane.b32.xlu1 %v2223_v1, %s2127_s22  ;;  %301 = vrot.lane.b32.xlu0 %v2216_v0, %s2127_s22 }
  0x50   :  { %313 = vrot.lane.b32.xlu1 %v2216_v0, %s2128_s23  ;;  %287 = vrot.lane.b32.xlu0 %v2230_v2, %s2126_s2 }
  0x54   :  { %261 = vrot.lane.b32.xlu1 %v2241_v3, %s2124_s20  ;;  %315 = vrot.lane.b32.xlu0 %v2223_v1, %s2128_s23  ;;  %s2138_s20 = smov 93  }
  0x58   :  { %299 = vrot.lane.b32.xlu1 %v2230_v2, %s2127_s22  ;;  %273 = vrot.lane.b32.xlu0 %v2241_v3, %s2125_s21 }
  0x5c   :  { %311 = vrot.lane.b32.xlu1 %v2230_v2, %s2128_s23  ;;  %285 = vrot.lane.b32.xlu0 %v2241_v3, %s2126_s2 }
  0x60   :  { %309 = vrot.lane.b32.xlu1 %v2241_v3, %s2128_s23  ;;  %297 = vrot.lane.b32.xlu0 %v2241_v3, %s2127_s22  ;;  %s2139_s22 = smov 124   ;;  %s2140_s23 = smov 20  }
  0x64   :  { %458 = vrot.lane.b32.xlu1 %v2223_v1, %s2129_s24  ;;  %456 = vrot.lane.b32.xlu0 %v2216_v0, %s2129_s24 }
  0x68   :  { %470 = vrot.lane.b32.xlu1 %v2223_v1, %s2130_s25  ;;  %468 = vrot.lane.b32.xlu0 %v2216_v0, %s2130_s25 }
  0x6c   :  { %482 = vrot.lane.b32.xlu1 %v2223_v1, %s2131_s26  ;;  %480 = vrot.lane.b32.xlu0 %v2216_v0, %s2131_s26 }
  0x70   :  { %466 = vrot.lane.b32.xlu1 %v2230_v2, %s2130_s25  ;;  %454 = vrot.lane.b32.xlu0 %v2230_v2, %s2129_s24 }
  0x74   :  { %494 = vrot.lane.b32.xlu1 %v2223_v1, %s2132_s27  ;;  %492 = vrot.lane.b32.xlu0 %v2216_v0, %s2132_s27 }
  0x78   :  { %504 = vrot.lane.b32.xlu1 %v2216_v0, %s2133_s28  ;;  %478 = vrot.lane.b32.xlu0 %v2230_v2, %s2131_s26 }
  0x7c   :  { %452 = vrot.lane.b32.xlu1 %v2241_v3, %s2129_s24  ;;  %506 = vrot.lane.b32.xlu0 %v2223_v1, %s2133_s28  ;;  %s2141_s24 = smov 44  }
  0x80   :  { %490 = vrot.lane.b32.xlu1 %v2230_v2, %s2132_s27  ;;  %464 = vrot.lane.b32.xlu0 %v2241_v3, %s2130_s25 }
  0x84   :  { %502 = vrot.lane.b32.xlu1 %v2230_v2, %s2133_s28  ;;  %476 = vrot.lane.b32.xlu0 %v2241_v3, %s2131_s26 }
  0x88   :  { %500 = vrot.lane.b32.xlu1 %v2241_v3, %s2133_s28  ;;  %488 = vrot.lane.b32.xlu0 %v2241_v3, %s2132_s27 }
  0x8c   :  { %649 = vrot.lane.b32.xlu1 %v2223_v1, %s2134_s29  ;;  %647 = vrot.lane.b32.xlu0 %v2216_v0, %s2134_s29 }
  0x8e   :  { %v91_v4 = vpop.permute.xlu1 %90  ;;  %v79_v5 = vpop.permute.xlu0 %78 }
  0x8f   :  { %v125_v8 = vsel %vm122_vm0, %v2216_v0, %v79_v5 }
  0x90   :  { %661 = vrot.lane.b32.xlu1 %v2223_v1, %s2135_s4  ;;  %659 = vrot.lane.b32.xlu0 %v2216_v0, %s2135_s4  ;;  %v130_v12 = vsel %vm127_vm1, %v125_v8, %v91_v4 }
  0x92   :  { %v93_v6 = vpop.permute.xlu1 %92  ;;  %v81_v7 = vpop.permute.xlu0 %80 }
  0x93   :  { %v126_v9 = vsel %vm122_vm0, %v2223_v1, %v81_v7 }
  0x94   :  { %673 = vrot.lane.b32.xlu1 %v2223_v1, %s2136_s30  ;;  %671 = vrot.lane.b32.xlu0 %v2216_v0, %s2136_s30  ;;  %v131_v10 = vsel %vm127_vm1, %v126_v9, %v93_v6 }
  0x96   :  { %v103_v11 = vpop.permute.xlu1 %102  ;;  %v77_v13 = vpop.permute.xlu0 %76 }
  0x97   :  { %v135_v14 = vsel %vm132_vm2, %v130_v12, %v103_v11  ;;  %v124_v15 = vsel %vm122_vm0, %v2230_v2, %v77_v13 }
  0x98   :  { %657 = vrot.lane.b32.xlu1 %v2230_v2, %s2135_s4  ;;  %645 = vrot.lane.b32.xlu0 %v2230_v2, %s2134_s29 }
  0x9a   :  { %v89_v16 = vpop.permute.xlu1 %88  ;;  %v105_v17 = vpop.permute.xlu0 %104 }
  0x9b   :  { %v129_v18 = vsel %vm127_vm1, %v124_v15, %v89_v16  ;;  %v136_v19 = vsel %vm132_vm2, %v131_v10, %v105_v17 }
  0x9c   :  { %685 = vrot.lane.b32.xlu1 %v2223_v1, %s2137_s12  ;;  %683 = vrot.lane.b32.xlu0 %v2216_v0, %s2137_s12 }
  0x9e   :  { %v117_v24 = vpop.permute.xlu1 %116  ;;  %v115_v25 = vpop.permute.xlu0 %114 }
  0x9f   :  { %v141_v26 = vsel %vm137_vm3, %v136_v19, %v117_v24  ;;  %v140_v27 = vsel %vm137_vm3, %v135_v14, %v115_v25 }
  0xa0   :  { %v161_v28 = vmul.f32 %v2323_v20, %v141_v26  ;;  %v188_v29 = vmul.f32 %v2328_v21, %v141_v26  ;;  %v215_v30 = vmul.f32 %v2333_v22, %v141_v26  ;;  %v242_v31 = vmul.f32 %v2338_v23, %v141_v26  ;;  %695 = vrot.lane.b32.xlu1 %v2216_v0, %s2138_s20 }
  0xa1   :  { %v160_v33 = vmul.f32 %v2323_v20, %v140_v27  ;;  %v187_v34 = vmul.f32 %v2328_v21, %v140_v27  ;;  %v214_v35 = vmul.f32 %v2333_v22, %v140_v27  ;;  %669 = vrot.lane.b32.xlu0 %v2230_v2, %s2136_s30  ;;  %v241_v45 = vmul.f32 %v2338_v23, %v140_v27 }
  0xa2   :  { %v172_v36 = vrot.slane %v161_v28, 1  ;;  %v199_v37 = vrot.slane %v188_v29, 2  ;;  %v226_v38 = vrot.slane %v215_v30, 3  ;;  %v253_v39 = vrot.slane %v242_v31, 4  ;;  %v101_v40 = vpop.permute.xlu1 %100  ;;  %v75_v41 = vpop.permute.xlu0 %74 }
  0xa3   :  { %v170_v42 = vrot.slane %v160_v33, 1  ;;  %v197_v43 = vrot.slane %v187_v34, 2  ;;  %v224_v44 = vrot.slane %v214_v35, 3  ;;  %v149_v46 = vmul.f32 %v2351_v32, %v140_v27 }
  0xa4   :  { %v134_v47 = vsel %vm132_vm2, %v129_v18, %v101_v40  ;;  %643 = vrot.lane.b32.xlu1 %v2241_v3, %s2134_s29  ;;  %v251_v51 = vrot.slane %v241_v45, 4  ;;  %v123_v53 = vsel %vm122_vm0, %v2241_v3, %v75_v41 }
  0xa5   :  { %v173_v48 = vsel %vm166_vm4, %v170_v42, %v172_v36  ;;  %v200_v49 = vsel %vm193_vm5, %v197_v43, %v199_v37  ;;  %v227_v50 = vsel %vm220_vm6, %v224_v44, %v226_v38  ;;  %697 = vrot.lane.b32.xlu0 %v2223_v1, %s2138_s20 }
  0xa6   :  { %v179_v52 = vadd.f32 %v173_v48, %v149_v46  ;;  %v113_v54 = vpop.permute.xlu1 %112  ;;  %v87_v55 = vpop.permute.xlu0 %86  ;;  %v254_v58 = vsel %vm247_vm7, %v251_v51, %v253_v39 }
  0xa7   :  { %v139_v56 = vsel %vm137_vm3, %v134_v47, %v113_v54  ;;  %v128_v57 = vsel %vm127_vm1, %v123_v53, %v87_v55 }
  0xa8   :  { %v206_v59 = vadd.f32 %v200_v49, %v179_v52  ;;  %v159_v60 = vmul.f32 %v2323_v20, %v139_v56  ;;  %v186_v61 = vmul.f32 %v2328_v21, %v139_v56  ;;  %681 = vrot.lane.b32.xlu1 %v2230_v2, %s2137_s12  ;;  %v213_v62 = vmul.f32 %v2333_v22, %v139_v56 }
  0xa9   :  { %v240_v63 = vmul.f32 %v2338_v23, %v139_v56  ;;  %655 = vrot.lane.b32.xlu0 %v2241_v3, %s2135_s4  ;;  %v148_v9 = vmul.f32 %v2351_v32, %v139_v56 }
  0xaa   :  { %v168_v4 = vrot.slane %v159_v60, 1  ;;  %v195_v5 = vrot.slane %v186_v61, 2  ;;  %v111_v6 = vpop.permute.xlu1 %110  ;;  %v99_v7 = vpop.permute.xlu0 %98  ;;  %v233_v8 = vadd.f32 %v227_v50, %v206_v59  ;;  %v222_v10 = vrot.slane %v213_v62, 3  ;;  %v2447_v59 = vld [vmem:[%s3045_s0 + $0xb] ss:$0 sm:$0xff] }
  0xab   :  { %v249_v11 = vrot.slane %v240_v63, 4  ;;  %v133_v12 = vsel %vm132_vm2, %v128_v57, %v99_v7  ;;  %v2437_v57 = vld [vmem:[%s3045_s0 + $0x1] ss:$0 sm:$0xff]  ;;  %v2452_v60 = vld [vmem:[%s3045_s0 + $0x10] ss:$0 sm:$0xff] }
  0xac   :  { %v171_v13 = vsel %vm166_vm4, %v168_v4, %v170_v42  ;;  %v198_v14 = vsel %vm193_vm5, %v195_v5, %v197_v43  ;;  %v138_v15 = vsel %vm137_vm3, %v133_v12, %v111_v6  ;;  %693 = vrot.lane.b32.xlu1 %v2230_v2, %s2138_s20  ;;  %v2388_v16 = vadd.f32 %v254_v58, %v233_v8  ;;  %v2442_v58 = vld [vmem:[%s3045_s0 + $0x6] ss:$0 sm:$0xff]  ;;  %v2457_v61 = vld [vmem:[%s3045_s0 + $0x15] ss:$0 sm:$0xff] }
  0xad   :  { %v178_v17 = vadd.f32 %v171_v13, %v148_v9  ;;  %v225_v18 = vsel %vm220_vm6, %v222_v10, %v224_v44  ;;  %v158_v19 = vmul.f32 %v2323_v20, %v138_v15  ;;  %667 = vrot.lane.b32.xlu0 %v2241_v3, %s2136_s30  ;;  %v185_v24 = vmul.f32 %v2328_v21, %v138_v15 }
  0xae   :  { %v212_v25 = vmul.f32 %v2333_v22, %v138_v15  ;;  %v239_v26 = vmul.f32 %v2338_v23, %v138_v15  ;;  %v268_v27 = vpop.permute.xlu1 %267  ;;  %v266_v28 = vpop.permute.xlu0 %265  ;;  %v252_v29 = vsel %vm247_vm7, %v249_v11, %v251_v51  ;;  %v147_v33 = vmul.f32 %v2351_v32, %v138_v15 }
  0xaf   :  { %v205_v30 = vadd.f32 %v198_v14, %v178_v17  ;;  %v167_v31 = vrot.slane %v158_v19, 1  ;;  %v194_v34 = vrot.slane %v185_v24, 2 }
  0xb0   :  { %v221_v35 = vrot.slane %v212_v25, 3  ;;  %v248_v20 = vrot.slane %v239_v26, 4  ;;  %691 = vrot.lane.b32.xlu1 %v2241_v3, %s2138_s20 }
  0xb1   :  { %v169_v21 = vsel %vm166_vm4, %v167_v31, %v168_v4  ;;  %679 = vrot.lane.b32.xlu0 %v2241_v3, %s2137_s12  ;;  %v232_v22 = vadd.f32 %v225_v18, %v205_v30  ;;  %v196_v36 = vsel %vm193_vm5, %v194_v34, %v195_v5 }
  0xb2   :  { %v177_v23 = vadd.f32 %v169_v21, %v147_v33  ;;  %v223_v37 = vsel %vm220_vm6, %v221_v35, %v222_v10  ;;  %v280_v38 = vpop.permute.xlu1 %279  ;;  %v278_v39 = vpop.permute.xlu0 %277  ;;  %v250_v32 = vsel %vm247_vm7, %v248_v20, %v249_v11 }
  0xb3   :  { %v324_v40 = vsel %vm122_vm0, %v268_v27, %v280_v38  ;;  %v323_v41 = vsel %vm122_vm0, %v266_v28, %v278_v39  ;;  %v2409_v42 = vadd.f32 %v252_v29, %v232_v22 }
  0xb4   :  { %v204_v43 = vadd.f32 %v196_v36, %v177_v23  ;;  %840 = vrot.lane.b32.xlu1 %v2223_v1, %s2139_s22 }
  0xb5   :  { %838 = vrot.lane.b32.xlu0 %v2216_v0, %s2139_s22 }
  0xb6   :  { %v292_v44 = vpop.permute.xlu1 %291  ;;  %v290_v45 = vpop.permute.xlu0 %289  ;;  %v231_v46 = vadd.f32 %v223_v37, %v204_v43 }
  0xb7   :  { %v328_v47 = vsel %vm127_vm1, %v324_v40, %v292_v44  ;;  %v327_v48 = vsel %vm127_vm1, %v323_v41, %v290_v45 }
  0xb8   :  { %852 = vrot.lane.b32.xlu1 %v2223_v1, %s2140_s23  ;;  %v2419_v49 = vadd.f32 %v250_v32, %v231_v46 }
  0xb9   :  { %850 = vrot.lane.b32.xlu0 %v2216_v0, %s2140_s23 }
  0xba   :  { %v276_v50 = vpop.permute.xlu1 %275  ;;  %v264_v51 = vpop.permute.xlu0 %263 }
  0xbb   :  { %v322_v52 = vsel %vm122_vm0, %v264_v51, %v276_v50 }
  0xbc   :  { %864 = vrot.lane.b32.xlu1 %v2223_v1, %s2141_s24 }
  0xbd   :  { %862 = vrot.lane.b32.xlu0 %v2216_v0, %s2141_s24 }
  0xbe   :  { %v304_v53 = vpop.permute.xlu1 %303  ;;  %v302_v54 = vpop.permute.xlu0 %301 }
  0xbf   :  { %v332_v55 = vsel %vm132_vm2, %v328_v47, %v304_v53  ;;  %v331_v56 = vsel %vm132_vm2, %v327_v48, %v302_v54 }
  0xc0   :  { %848 = vrot.lane.b32.xlu1 %v2230_v2, %s2140_s23 }
  0xc1   :  { %836 = vrot.lane.b32.xlu0 %v2230_v2, %s2139_s22 }
  0xc2   :  { %v314_v62 = vpop.permute.xlu1 %313  ;;  %v288_v63 = vpop.permute.xlu0 %287 }
  0xc3   :  { %v335_v4 = vsel %vm137_vm3, %v331_v56, %v314_v62  ;;  %v326_v5 = vsel %vm127_vm1, %v322_v52, %v288_v63 }
  0xc4   :  { %v344_v6 = vmul.f32 %v2437_v57, %v335_v4  ;;  %876 = vrot.lane.b32.xlu1 %v2223_v1, %s2142_s9  ;;  %v355_v7 = vmul.f32 %v2442_v58, %v335_v4  ;;  %v381_v8 = vmul.f32 %v2447_v59, %v335_v4  ;;  %v407_v9 = vmul.f32 %v2452_v60, %v335_v4 }
  0xc5   :  { %v2468_v10 = vmul.f32 %v2457_v61, %v335_v4  ;;  %874 = vrot.lane.b32.xlu0 %v2216_v0, %s2142_s9 }
  0xc6   :  { %v347_v11 = vadd.f32 %v344_v6, %v2388_v16  ;;  %v262_v12 = vpop.permute.xlu1 %261  ;;  %v316_v13 = vpop.permute.xlu0 %315  ;;  %v364_v24 = vrot.slane %v355_v7, 1  ;;  %v390_v25 = vrot.slane %v381_v8, 2  ;;  %v416_v26 = vrot.slane %v407_v9, 3 }
  0xc7   :  { %v336_v14 = vsel %vm137_vm3, %v332_v55, %v316_v13  ;;  %v442_v16 = vrot.slane %v2468_v10, 4 }
  0xc8   :  { %v356_v15 = vmul.f32 %v2442_v58, %v336_v14  ;;  %v382_v17 = vmul.f32 %v2447_v59, %v336_v14  ;;  %v408_v18 = vmul.f32 %v2452_v60, %v336_v14  ;;  %v434_v19 = vmul.f32 %v2457_v61, %v336_v14  ;;  %886 = vrot.lane.b32.xlu1 %v2216_v0, %s2143_s15 }
  0xc9   :  { %860 = vrot.lane.b32.xlu0 %v2230_v2, %s2141_s24 }
  0xca   :  { %v366_v27 = vrot.slane %v356_v15, 1  ;;  %v392_v28 = vrot.slane %v382_v17, 2  ;;  %v418_v29 = vrot.slane %v408_v18, 3  ;;  %v444_v30 = vrot.slane %v434_v19, 4  ;;  %v300_v31 = vpop.permute.xlu1 %299  ;;  %v274_v33 = vpop.permute.xlu0 %273 }
  0xcb   :  { %v330_v34 = vsel %vm132_vm2, %v326_v5, %v300_v31  ;;  %v321_v35 = vsel %vm122_vm0, %v262_v12, %v274_v33 }
  0xcc   :  { %v367_v0 = vsel %vm166_vm4, %v364_v24, %v366_v27  ;;  %v393_v20 = vsel %vm193_vm5, %v390_v25, %v392_v28  ;;  %v419_v21 = vsel %vm220_vm6, %v416_v26, %v418_v29  ;;  %v445_v22 = vsel %vm247_vm7, %v442_v16, %v444_v30  ;;  %834 = vrot.lane.b32.xlu1 %v2241_v3, %s2139_s22 }
  0xcd   :  { %v373_v23 = vadd.f32 %v367_v0, %v347_v11  ;;  %888 = vrot.lane.b32.xlu0 %v2223_v1, %s2143_s15 }
  0xce   :  { %v312_v36 = vpop.permute.xlu1 %311  ;;  %v286_v37 = vpop.permute.xlu0 %285 }
  0xcf   :  { %v399_v38 = vadd.f32 %v393_v20, %v373_v23  ;;  %v334_v39 = vsel %vm137_vm3, %v330_v34, %v312_v36  ;;  %v325_v32 = vsel %vm127_vm1, %v321_v35, %v286_v37  ;;  %v2545_v36 = vld [vmem:[%s3045_s0 + $0x2] ss:$0 sm:$0xff]  ;;  %v2550_v37 = vld [vmem:[%s3045_s0 + $0x7] ss:$0 sm:$0xff] }
  0xd0   :  { %v343_v40 = vmul.f32 %v2437_v57, %v334_v39  ;;  %v354_v41 = vmul.f32 %v2442_v58, %v334_v39  ;;  %v380_v43 = vmul.f32 %v2447_v59, %v334_v39  ;;  %v406_v44 = vmul.f32 %v2452_v60, %v334_v39  ;;  %872 = vrot.lane.b32.xlu1 %v2230_v2, %s2142_s9 }
  0xd1   :  { %v425_v45 = vadd.f32 %v419_v21, %v399_v38  ;;  %v432_v1 = vmul.f32 %v2457_v61, %v334_v39  ;;  %846 = vrot.lane.b32.xlu0 %v2241_v3, %s2140_s23  ;;  %v2555_v38 = vld [vmem:[%s3045_s0 + $0xc] ss:$0 sm:$0xff]  ;;  %v2560_v39 = vld [vmem:[%s3045_s0 + $0x11] ss:$0 sm:$0xff] }
  0xd2   :  { %v346_v46 = vadd.f32 %v343_v40, %v2409_v42  ;;  %v362_v47 = vrot.slane %v354_v41, 1  ;;  %v388_v48 = vrot.slane %v380_v43, 2  ;;  %v414_v50 = vrot.slane %v406_v44, 3  ;;  %v310_v51 = vpop.permute.xlu1 %309  ;;  %v298_v52 = vpop.permute.xlu0 %297 }
  0xd3   :  { %v2505_v53 = vadd.f32 %v445_v22, %v425_v45  ;;  %v440_v54 = vrot.slane %v432_v1, 4  ;;  %v329_v55 = vsel %vm132_vm2, %v325_v32, %v298_v52  ;;  %v2565_v32 = vld [vmem:[%s3045_s0 + $0x16] ss:$0 sm:$0xff] }
  0xd4   :  { %v365_v56 = vsel %vm166_vm4, %v362_v47, %v364_v24  ;;  %v391_v62 = vsel %vm193_vm5, %v388_v48, %v390_v25  ;;  %v417_v63 = vsel %vm220_vm6, %v414_v50, %v416_v26  ;;  %v333_v4 = vsel %vm137_vm3, %v329_v55, %v310_v51  ;;  %884 = vrot.lane.b32.xlu1 %v2230_v2, %s2143_s15 }
  0xd5   :  { %v372_v42 = vadd.f32 %v365_v56, %v346_v46  ;;  %v342_v5 = vmul.f32 %v2437_v57, %v333_v4  ;;  %v353_v6 = vmul.f32 %v2442_v58, %v333_v4  ;;  %v379_v7 = vmul.f32 %v2447_v59, %v333_v4  ;;  %858 = vrot.lane.b32.xlu0 %v2241_v3, %s2141_s24  ;;  %v1038_v46 = vld [vmem:[%s3048_s3] sm:$0xff] }
  0xd6   :  { %v405_v8 = vmul.f32 %v2452_v60, %v333_v4  ;;  %v431_v9 = vmul.f32 %v2457_v61, %v333_v4  ;;  %v459_v10 = vpop.permute.xlu1 %458  ;;  %v457_v11 = vpop.permute.xlu0 %456  ;;  %v443_v12 = vsel %vm247_vm7, %v440_v54, %v442_v16  ;;  %1932 = vmatprep.mubr.msk.f32.mxu0 %vm122_vm0, %v1038_v46 }
  0xd7   :  { %v398_v13 = vadd.f32 %v391_v62, %v372_v42  ;;  %v345_v2 = vadd.f32 %v342_v5, %v2419_v49  ;;  %v361_v14 = vrot.slane %v353_v6, 1  ;;  %v387_v57 = vrot.slane %v379_v7, 2 }
  0xd8   :  { %v413_v15 = vrot.slane %v405_v8, 3  ;;  %v439_v58 = vrot.slane %v431_v9, 4  ;;  %882 = vrot.lane.b32.xlu1 %v2241_v3, %s2143_s15 }
  0xd9   :  { %v363_v59 = vsel %vm166_vm4, %v361_v14, %v362_v47  ;;  %v389_v60 = vsel %vm193_vm5, %v387_v57, %v388_v48  ;;  %870 = vrot.lane.b32.xlu0 %v2241_v3, %s2142_s9  ;;  %v424_v61 = vadd.f32 %v417_v63, %v398_v13  ;;  %v1121_v47 = vld [vmem:[#allocation2] sm:$0xff] }
  0xda   :  { %v371_v17 = vadd.f32 %v363_v59, %v345_v2  ;;  %v415_v18 = vsel %vm220_vm6, %v413_v15, %v414_v50  ;;  %v471_v19 = vpop.permute.xlu1 %470  ;;  %v469_v49 = vpop.permute.xlu0 %468  ;;  %v441_v24 = vsel %vm247_vm7, %v439_v58, %v440_v54  ;;  %1941 = vmatprep.mubr.msk.f32.mxu1 %vm122_vm0, %v1121_v47 }
  0xdb   :  { %v515_v25 = vsel %vm122_vm0, %v459_v10, %v471_v19  ;;  %v514_v26 = vsel %vm122_vm0, %v457_v11, %v469_v49  ;;  %v2533_v16 = vadd.f32 %v443_v12, %v424_v61 }
  0xdc   :  { %v397_v27 = vadd.f32 %v389_v60, %v371_v17 }
  0xde   :  { %v483_v28 = vpop.permute.xlu1 %482  ;;  %v481_v29 = vpop.permute.xlu0 %480  ;;  %v423_v30 = vadd.f32 %v415_v18, %v397_v27 }
  0xdf   :  { %v519_v3 = vsel %vm127_vm1, %v515_v25, %v483_v28  ;;  %v518_v31 = vsel %vm127_vm1, %v514_v26, %v481_v29 }
  0xe0   :  { %v2537_v33 = vadd.f32 %v441_v24, %v423_v30 }
  0xe2   :  { %v467_v34 = vpop.permute.xlu1 %466  ;;  %v455_v35 = vpop.permute.xlu0 %454 }
  0xe3   :  { %v513_v0 = vsel %vm122_vm0, %v455_v35, %v467_v34 }
  0xe6   :  { %v495_v20 = vpop.permute.xlu1 %494  ;;  %v493_v21 = vpop.permute.xlu0 %492 }
  0xe7   :  { %v523_v22 = vsel %vm132_vm2, %v519_v3, %v495_v20  ;;  %v522_v23 = vsel %vm132_vm2, %v518_v31, %v493_v21 }
  0xea   :  { %v505_v40 = vpop.permute.xlu1 %504  ;;  %v479_v41 = vpop.permute.xlu0 %478 }
  0xeb   :  { %v526_v43 = vsel %vm137_vm3, %v522_v23, %v505_v40  ;;  %v517_v44 = vsel %vm127_vm1, %v513_v0, %v479_v41 }
  0xec   :  { %v535_v45 = vmul.f32 %v2545_v36, %v526_v43  ;;  %v546_v1 = vmul.f32 %v2550_v37, %v526_v43  ;;  %v572_v48 = vmul.f32 %v2555_v38, %v526_v43  ;;  %v598_v50 = vmul.f32 %v2560_v39, %v526_v43 }
  0xed   :  { %v624_v51 = vmul.f32 %v2565_v32, %v526_v43 }
  0xee   :  { %v538_v52 = vadd.f32 %v535_v45, %v2505_v53  ;;  %v453_v54 = vpop.permute.xlu1 %452  ;;  %v507_v55 = vpop.permute.xlu0 %506  ;;  %v555_v5 = vrot.slane %v546_v1, 1  ;;  %v581_v6 = vrot.slane %v572_v48, 2  ;;  %v607_v7 = vrot.slane %v598_v50, 3 }
  0xef   :  { %v527_v56 = vsel %vm137_vm3, %v523_v22, %v507_v55  ;;  %v633_v8 = vrot.slane %v624_v51, 4 }
  0xf0   :  { %v547_v62 = vmul.f32 %v2550_v37, %v527_v56  ;;  %v573_v63 = vmul.f32 %v2555_v38, %v527_v56  ;;  %v599_v4 = vmul.f32 %v2560_v39, %v527_v56  ;;  %v625_v42 = vmul.f32 %v2565_v32, %v527_v56 }
  0xf2   :  { %v557_v9 = vrot.slane %v547_v62, 1  ;;  %v583_v10 = vrot.slane %v573_v63, 2  ;;  %v609_v11 = vrot.slane %v599_v4, 3  ;;  %v635_v53 = vrot.slane %v625_v42, 4  ;;  %v491_v12 = vpop.permute.xlu1 %490  ;;  %v465_v13 = vpop.permute.xlu0 %464 }
  0xf3   :  { %v512_v2 = vsel %vm122_vm0, %v453_v54, %v465_v13  ;;  %v521_v60 = vsel %vm132_vm2, %v517_v44, %v491_v12 }
  0xf4   :  { %v558_v14 = vsel %vm166_vm4, %v555_v5, %v557_v9  ;;  %v584_v57 = vsel %vm193_vm5, %v581_v6, %v583_v10  ;;  %v610_v15 = vsel %vm220_vm6, %v607_v7, %v609_v11  ;;  %v636_v58 = vsel %vm247_vm7, %v633_v8, %v635_v53 }
  0xf5   :  { %v564_v59 = vadd.f32 %v558_v14, %v538_v52 }
  0xf6   :  { %v503_v61 = vpop.permute.xlu1 %502  ;;  %v477_v17 = vpop.permute.xlu0 %476 }
  0xf7   :  { %v590_v18 = vadd.f32 %v584_v57, %v564_v59  ;;  %v525_v19 = vsel %vm137_vm3, %v521_v60, %v503_v61  ;;  %v516_v29 = vsel %vm127_vm1, %v512_v2, %v477_v17 }
  0xf8   :  { %v534_v49 = vmul.f32 %v2545_v36, %v525_v19  ;;  %v545_v24 = vmul.f32 %v2550_v37, %v525_v19  ;;  %v571_v25 = vmul.f32 %v2555_v38, %v525_v19  ;;  %v597_v26 = vmul.f32 %v2560_v39, %v525_v19 }
  0xf9   :  { %v616_v27 = vadd.f32 %v610_v15, %v590_v18  ;;  %v623_v28 = vmul.f32 %v2565_v32, %v525_v19 }
  0xfa   :  { %v537_v30 = vadd.f32 %v534_v49, %v2533_v16  ;;  %v553_v3 = vrot.slane %v545_v24, 1  ;;  %v579_v31 = vrot.slane %v571_v25, 2  ;;  %v605_v34 = vrot.slane %v597_v26, 3  ;;  %v501_v35 = vpop.permute.xlu1 %500  ;;  %v489_v0 = vpop.permute.xlu0 %488 }
  0xfb   :  { %v2599_v20 = vadd.f32 %v636_v58, %v616_v27  ;;  %v631_v21 = vrot.slane %v623_v28, 4  ;;  %v520_v22 = vsel %vm132_vm2, %v516_v29, %v489_v0  ;;  %v1842_v29 = vld [vmem:[%s3045_s0 + $0x8] ss:$0 sm:$0xff]  ;;  %v1841_v0 = vld [vmem:[%s3045_s0 + $0x3] ss:$0 sm:$0xff] }
  0xfc   :  { %v556_v23 = vsel %vm166_vm4, %v553_v3, %v555_v5  ;;  %v582_v40 = vsel %vm193_vm5, %v579_v31, %v581_v6  ;;  %v608_v41 = vsel %vm220_vm6, %v605_v34, %v607_v7  ;;  %v524_v43 = vsel %vm137_vm3, %v520_v22, %v501_v35 }
  0xfd   :  { %v563_v44 = vadd.f32 %v556_v23, %v537_v30  ;;  %v533_v16 = vmul.f32 %v2545_v36, %v524_v43  ;;  %v544_v45 = vmul.f32 %v2550_v37, %v524_v43  ;;  %v570_v1 = vmul.f32 %v2555_v38, %v524_v43 }
  0xfe   :  { %v596_v46 = vmul.f32 %v2560_v39, %v524_v43  ;;  %v622_v47 = vmul.f32 %v2565_v32, %v524_v43  ;;  %v650_v48 = vpop.permute.xlu1 %649  ;;  %v648_v50 = vpop.permute.xlu0 %647  ;;  %v634_v51 = vsel %vm247_vm7, %v631_v21, %v633_v8 }
  0xff   :  { %v589_v52 = vadd.f32 %v582_v40, %v563_v44  ;;  %v536_v54 = vadd.f32 %v533_v16, %v2537_v33  ;;  %v552_v55 = vrot.slane %v544_v45, 1  ;;  %v578_v56 = vrot.slane %v570_v1, 2  ;;  %v1843_v44 = vld [vmem:[%s3045_s0 + $0xd] ss:$0 sm:$0xff] }
 0x100   :  { %v604_v62 = vrot.slane %v596_v46, 3  ;;  %v630_v63 = vrot.slane %v622_v47, 4 }
 0x101   :  { %v554_v36 = vsel %vm166_vm4, %v552_v55, %v553_v3  ;;  %v580_v37 = vsel %vm193_vm5, %v578_v56, %v579_v31  ;;  %v615_v38 = vadd.f32 %v608_v41, %v589_v52  ;;  %v1844_v56 = vld [vmem:[%s3045_s0 + $0x12] ss:$0 sm:$0xff] }
 0x102   :  { %v562_v4 = vadd.f32 %v554_v36, %v536_v54  ;;  %v606_v39 = vsel %vm220_vm6, %v604_v62, %v605_v34  ;;  %v662_v32 = vpop.permute.xlu1 %661  ;;  %v660_v42 = vpop.permute.xlu0 %659  ;;  %v632_v5 = vsel %vm247_vm7, %v630_v63, %v631_v21 }
 0x103   :  { %v2617_v6 = vadd.f32 %v634_v51, %v615_v38  ;;  %v706_v17 = vsel %vm122_vm0, %v650_v48, %v662_v32  ;;  %v705_v19 = vsel %vm122_vm0, %v648_v50, %v660_v42  ;;  %v1845_v42 = vld [vmem:[%s3045_s0 + $0x17] ss:$0 sm:$0xff] }
 0x104   :  { %v588_v7 = vadd.f32 %v580_v37, %v562_v4 }
 0x106   :  { %v674_v33 = vpop.permute.xlu1 %673  ;;  %v672_v8 = vpop.permute.xlu0 %671  ;;  %v614_v9 = vadd.f32 %v606_v39, %v588_v7 }
 0x107   :  { %v710_v18 = vsel %vm127_vm1, %v706_v17, %v674_v33  ;;  %v709_v25 = vsel %vm127_vm1, %v705_v19, %v672_v8 }
 0x108   :  { %v2619_v10 = vadd.f32 %v632_v5, %v614_v9 }
 0x10a   :  { %v658_v11 = vpop.permute.xlu1 %657  ;;  %v646_v53 = vpop.permute.xlu0 %645 }
 0x10b   :  { %v704_v34 = vsel %vm122_vm0, %v646_v53, %v658_v11 }
 0x10e   :  { %v686_v12 = vpop.permute.xlu1 %685  ;;  %v684_v13 = vpop.permute.xlu0 %683 }
 0x10f   :  { %v714_v49 = vsel %vm132_vm2, %v710_v18, %v686_v12  ;;  %v713_v28 = vsel %vm132_vm2, %v709_v25, %v684_v13 }
 0x112   :  { %v696_v2 = vpop.permute.xlu1 %695 }
 0x113   :  { %v670_v14 = vpop.permute.xlu0 %669  ;;  %v717_v30 = vsel %vm137_vm3, %v713_v28, %v696_v2 }
 0x114   :  { %v737_v21 = vmul.f32 %v1842_v29, %v717_v30  ;;  %v708_v22 = vsel %vm127_vm1, %v704_v34, %v670_v14  ;;  %v726_v16 = vmul.f32 %v1841_v0, %v717_v30  ;;  %v763_v52 = vmul.f32 %v1843_v44, %v717_v30 }
 0x115   :  { %v789_v7 = vmul.f32 %v1844_v56, %v717_v30  ;;  %v815_v2 = vmul.f32 %v1845_v42, %v717_v30 }
 0x116   :  { %v644_v57 = vpop.permute.xlu1 %643  ;;  %v746_v46 = vrot.slane %v737_v21, 1  ;;  %v729_v62 = vadd.f32 %v726_v16, %v2599_v20  ;;  %v772_v5 = vrot.slane %v763_v52, 2 }
 0x117   :  { %v698_v15 = vpop.permute.xlu0 %697 }
 0x118   :  { %v718_v26 = vsel %vm137_vm3, %v714_v49, %v698_v15  ;;  %v798_v15 = vrot.slane %v789_v7, 3 }
 0x119   :  { %v738_v3 = vmul.f32 %v1842_v29, %v718_v26  ;;  %v764_v47 = vmul.f32 %v1843_v44, %v718_v26  ;;  %v790_v37 = vmul.f32 %v1844_v56, %v718_v26  ;;  %v816_v12 = vmul.f32 %v1845_v42, %v718_v26 }
 0x11a   :  { %v682_v58 = vpop.permute.xlu1 %681 }
 0x11b   :  { %v656_v59 = vpop.permute.xlu0 %655  ;;  %v712_v23 = vsel %vm132_vm2, %v708_v22, %v682_v58  ;;  %v748_v40 = vrot.slane %v738_v3, 1  ;;  %v774_v36 = vrot.slane %v764_v47, 2  ;;  %v800_v53 = vrot.slane %v790_v37, 3  ;;  %v2691_v47 = vld [vmem:[%s3045_s0 + $0x4] ss:$0 sm:$0xff] }
 0x11c   :  { %v703_v45 = vsel %vm122_vm0, %v644_v57, %v656_v59 }
 0x11d   :  { %v749_v54 = vsel %vm166_vm4, %v746_v46, %v748_v40  ;;  %v775_v20 = vsel %vm193_vm5, %v772_v5, %v774_v36  ;;  %v801_v49 = vsel %vm220_vm6, %v798_v15, %v800_v53 }
 0x11e   :  { %v694_v60 = vpop.permute.xlu1 %693  ;;  %v755_v39 = vadd.f32 %v749_v54, %v729_v62  ;;  %v2700_v54 = vld [vmem:[%s3045_s0 + $0xe] ss:$0 sm:$0xff] }
 0x11f   :  { %v668_v61 = vpop.permute.xlu0 %667  ;;  %v716_v41 = vsel %vm137_vm3, %v712_v23, %v694_v60 }
 0x120   :  { %v707_v48 = vsel %vm127_vm1, %v703_v45, %v668_v61  ;;  %v736_v50 = vmul.f32 %v1842_v29, %v716_v41  ;;  %v725_v38 = vmul.f32 %v1841_v0, %v716_v41  ;;  %v762_v8 = vmul.f32 %v1843_v44, %v716_v41  ;;  %v2682_v45 = vld [vmem:[%s3045_s0 + $0x9] ss:$0 sm:$0xff] }
 0x121   :  { %v781_v14 = vadd.f32 %v775_v20, %v755_v39  ;;  %v2665_v58 = vmul.f32 %v1844_v56, %v716_v41  ;;  %v2667_v59 = vmul.f32 %v1845_v42, %v716_v41 }
 0x122   :  { %v692_v24 = vpop.permute.xlu1 %691  ;;  %v744_v32 = vrot.slane %v736_v50, 1  ;;  %v728_v13 = vadd.f32 %v725_v38, %v2617_v6  ;;  %v770_v17 = vrot.slane %v762_v8, 2  ;;  %v824_v6 = vrot.slane %v815_v2, 4 }
 0x123   :  { %v680_v27 = vpop.permute.xlu0 %679  ;;  %v822_v30 = vrot.slane %v2667_v59, 4 }
 0x124   :  { %v711_v51 = vsel %vm132_vm2, %v707_v48, %v680_v27  ;;  %v747_v57 = vsel %vm166_vm4, %v744_v32, %v746_v46  ;;  %v807_v27 = vadd.f32 %v801_v49, %v781_v14  ;;  %v773_v21 = vsel %vm193_vm5, %v770_v17, %v772_v5 }
 0x125   :  { %v715_v4 = vsel %vm137_vm3, %v711_v51, %v692_v24  ;;  %v826_v24 = vrot.slane %v816_v12, 4  ;;  %v754_v25 = vadd.f32 %v747_v57, %v728_v13  ;;  %v825_v37 = vsel %vm247_vm7, %v822_v30, %v824_v6 }
 0x126   :  { %v2632_v31 = vpop.permute.xlu1 %840  ;;  %v735_v9 = vmul.f32 %v1842_v29, %v715_v4  ;;  %v724_v60 = vmul.f32 %v1841_v0, %v715_v4  ;;  %v761_v26 = vmul.f32 %v1843_v44, %v715_v4  ;;  %v796_v29 = vrot.slane %v2665_v58, 3 }
 0x127   :  { %v839_v35 = vpop.permute.xlu0 %838  ;;  %v787_v23 = vmul.f32 %v1844_v56, %v715_v4  ;;  %v827_v44 = vsel %vm247_vm7, %v824_v6, %v826_v24  ;;  %v2694_v51 = vmul.f32 %v1845_v42, %v715_v4 }
 0x128   :  { %v743_v18 = vrot.slane %v735_v9, 1  ;;  %v727_v3 = vadd.f32 %v724_v60, %v2619_v10  ;;  %v769_v16 = vrot.slane %v761_v26, 2  ;;  %v799_v48 = vsel %vm220_vm6, %v796_v29, %v798_v15 }
 0x129   :  { %v795_v62 = vrot.slane %v787_v23, 3  ;;  %v821_v9 = vrot.slane %v2694_v51, 4  ;;  %v1851_v51 = vld [vmem:[%s3046_s1] ss:$0 sm:$0xff] }
 0x12a   :  { %v2641_v43 = vpop.permute.xlu1 %852  ;;  %v745_v22 = vsel %vm166_vm4, %v743_v18, %v744_v32  ;;  %v771_v38 = vsel %vm193_vm5, %v769_v16, %v770_v17 }
 0x12b   :  { %v851_v1 = vpop.permute.xlu0 %850  ;;  %v897_v46 = vsel %vm122_vm0, %v2632_v31, %v2641_v43  ;;  %v753_v50 = vadd.f32 %v745_v22, %v727_v3  ;;  %v2706_v43 = vld [vmem:[%s3045_s0 + $0x13] ss:$0 sm:$0xff]  ;;  %v797_v18 = vsel %vm220_vm6, %v795_v62, %v796_v29 }
 0x12c   :  { %v896_v28 = vsel %vm122_vm0, %v839_v35, %v851_v1  ;;  %v780_v35 = vadd.f32 %v773_v21, %v754_v25  ;;  %v833_v1 = vadd.f32 %v827_v44, %v807_v27 }
 0x12d   :  { %v779_v13 = vadd.f32 %v771_v38, %v753_v50 }
 0x12e   :  { %v865_v55 = vpop.permute.xlu1 %864  ;;  %v806_v32 = vadd.f32 %v799_v48, %v780_v35 }
 0x12f   :  { %v863_v63 = vpop.permute.xlu0 %862  ;;  %v901_v52 = vsel %vm127_vm1, %v897_v46, %v865_v55  ;;  %v805_v3 = vadd.f32 %v797_v18, %v779_v13 }
 0x130   :  { %v900_v34 = vsel %vm127_vm1, %v896_v28, %v863_v63  ;;  %v2711_v63 = vld [vmem:[%s3045_s0 + $0x18] ss:$0 sm:$0xff]  ;;  %v832_v17 = vadd.f32 %v825_v37, %v806_v32 }
 0x132   :  { %v2658_v33 = vpop.permute.xlu1 %848 }
 0x133   :  { %v2660_v11 = vpop.permute.xlu0 %836 }
 0x134   :  { %v895_v60 = vsel %vm122_vm0, %v2660_v11, %v2658_v33 }
 0x136   :  { %v877_v61 = vpop.permute.xlu1 %876 }
 0x137   :  { %v875_v19 = vpop.permute.xlu0 %874  ;;  %v905_v31 = vsel %vm132_vm2, %v901_v52, %v877_v61 }
 0x138   :  { %v904_v40 = vsel %vm132_vm2, %v900_v34, %v875_v19 }
 0x13a   :  { %v887_v0 = vpop.permute.xlu1 %886 }
 0x13b   :  { %v861_v41 = vpop.permute.xlu0 %860  ;;  %v908_v10 = vsel %vm137_vm3, %v904_v40, %v887_v0 }
 0x13c   :  { %v928_v55 = vmul.f32 %v2682_v45, %v908_v10  ;;  %v917_v4 = vmul.f32 %v2691_v47, %v908_v10  ;;  %v954_v42 = vmul.f32 %v2700_v54, %v908_v10  ;;  %v980_v20 = vmul.f32 %v2706_v43, %v908_v10 }
 0x13d   :  { %v2727_v53 = vmul.f32 %v2711_v63, %v908_v10  ;;  %v899_v49 = vsel %vm127_vm1, %v895_v60, %v861_v41 }
 0x13e   :  { %v835_v56 = vpop.permute.xlu1 %834  ;;  %v937_v2 = vrot.slane %v928_v55, 1  ;;  %v920_v61 = vadd.f32 %v917_v4, %v833_v1  ;;  %v963_v19 = vrot.slane %v954_v42, 2  ;;  %v989_v26 = vrot.slane %v980_v20, 3 }
 0x13f   :  { %v889_v36 = vpop.permute.xlu0 %888  ;;  %v1015_v34 = vrot.slane %v2727_v53, 4 }
 0x140   :  { %v909_v39 = vsel %vm137_vm3, %v905_v31, %v889_v36 }
 0x141   :  { %v929_v5 = vmul.f32 %v2682_v45, %v909_v39  ;;  %v955_v7 = vmul.f32 %v2700_v54, %v909_v39  ;;  %v981_v8 = vmul.f32 %v2706_v43, %v909_v39  ;;  %v1007_v15 = vmul.f32 %v2711_v63, %v909_v39 }
 0x142   :  { %v873_v12 = vpop.permute.xlu1 %872 }
 0x143   :  { %v939_v14 = vrot.slane %v929_v5, 1  ;;  %v965_v57 = vrot.slane %v955_v7, 2  ;;  %v847_v58 = vpop.permute.xlu0 %846  ;;  %v991_v25 = vrot.slane %v981_v8, 3  ;;  %v903_v27 = vsel %vm132_vm2, %v899_v49, %v873_v12 }
 0x144   :  { %v1017_v11 = vrot.slane %v1007_v15, 4  ;;  %v894_v44 = vsel %vm122_vm0, %v835_v56, %v847_v58  ;;  %v823_v56 = vsel %vm247_vm7, %v821_v9, %v822_v30 }
 0x145   :  { %v940_v24 = vsel %vm166_vm4, %v937_v2, %v939_v14  ;;  %v966_v33 = vsel %vm193_vm5, %v963_v19, %v965_v57  ;;  %v992_v41 = vsel %vm220_vm6, %v989_v26, %v991_v25  ;;  %v831_v4 = vadd.f32 %v823_v56, %v805_v3  ;;  %v1220_v3 = vld [vmem:[%s3050_s5 + $0x70] sm:$0xff] }
 0x146   :  { %v946_v6 = vadd.f32 %v940_v24, %v920_v61  ;;  %v885_v28 = vpop.permute.xlu1 %884  ;;  %v1018_v52 = vsel %vm247_vm7, %v1015_v34, %v1017_v11  ;;  %v1316_v11 = vld [vmem:[%s3051_s6 + $0x68] sm:$0xff]  ;;  %v1208_v56 = vld [vmem:[%s3050_s5 + $0x10] sm:$0xff] }
 0x147   :  { %v907_v0 = vsel %vm137_vm3, %v903_v27, %v885_v28  ;;  %v859_v29 = vpop.permute.xlu0 %858  ;;  %v1039_v27 = vld [vmem:[%s3048_s3 + $0x8] sm:$0xf] }
 0x148   :  { %v972_v21 = vadd.f32 %v966_v33, %v946_v6  ;;  %v916_v22 = vmul.f32 %v2691_v47, %v907_v0  ;;  %v927_v23 = vmul.f32 %v2682_v45, %v907_v0  ;;  %v953_v40 = vmul.f32 %v2700_v54, %v907_v0  ;;  %v1122_v28 = vld [vmem:[#allocation2 + $0x8] sm:$0xf] }
 0x149   :  { %v979_v35 = vmul.f32 %v2706_v43, %v907_v0  ;;  %v1005_v16 = vmul.f32 %v2711_v63, %v907_v0  ;;  %v898_v31 = vsel %vm127_vm1, %v894_v44, %v859_v29  ;;  %v1219_v33 = vld [vmem:[%s3050_s5 + $0x68] sm:$0xff]  ;;  %v1218_v0 = vld [vmem:[%s3050_s5 + $0x60] sm:$0xff] }
 0x14a   :  { %v998_v10 = vadd.f32 %v992_v41, %v972_v21  ;;  %v919_v1 = vadd.f32 %v916_v22, %v832_v17  ;;  %v935_v46 = vrot.slane %v927_v23, 1  ;;  %v961_v48 = vrot.slane %v953_v40, 2  ;;  %v883_v50 = vpop.permute.xlu1 %882  ;;  %v1315_v29 = vld [vmem:[%s3051_s6 + $0x60] sm:$0xff]  ;;  %v1217_v21 = vld [vmem:[%s3050_s5 + $0x58] sm:$0xff]  ;;  %v1216_v23 = vld [vmem:[%s3050_s5 + $0x50] sm:$0xff] }
 0x14b   :  { %v987_v62 = vrot.slane %v979_v35, 3  ;;  %v871_v55 = vpop.permute.xlu0 %870  ;;  %v1013_v42 = vrot.slane %v1005_v16, 4  ;;  %v1314_v22 = vld [vmem:[%s3051_s6 + $0x58] sm:$0xff]  ;;  %v1313_v40 = vld [vmem:[%s3051_s6 + $0x50] sm:$0xff]  ;;  %v1215_v41 = vld [vmem:[%s3050_s5 + $0x48] sm:$0xff] }
 0x14c   :  { %v1024_v36 = vadd.f32 %v1018_v52, %v998_v10  ;;  %v938_v37 = vsel %vm166_vm4, %v935_v46, %v937_v2  ;;  %v902_v38 = vsel %vm132_vm2, %v898_v31, %v871_v55  ;;  %v964_v32 = vsel %vm193_vm5, %v961_v48, %v963_v19  ;;  %v1312_v44 = vld [vmem:[%s3051_s6 + $0x48] sm:$0xff]  ;;  %v1214_v35 = vld [vmem:[%s3050_s5 + $0x40] sm:$0xff]  ;;  %v1213_v10 = vld [vmem:[%s3050_s5 + $0x38] sm:$0xff] }
 0x14d   :  { %v945_v39 = vadd.f32 %v938_v37, %v919_v1  ;;  %v906_v5 = vsel %vm137_vm3, %v902_v38, %v883_v50  ;;  %v990_v9 = vsel %vm220_vm6, %v987_v62, %v989_v26  ;;  %v1016_v15 = vsel %vm247_vm7, %v1013_v42, %v1015_v34  ;;  %v1317_v34 = vld [vmem:[%s3051_s6 + $0x70] sm:$0xff]  ;;  %v1311_v16 = vld [vmem:[%s3051_s6 + $0x40] sm:$0xff]  ;;  %v1310_v1 = vld [vmem:[%s3051_s6 + $0x38] sm:$0xff] }
 0x14e   :  { %v1034_v7 = vadd.f32 %v1851_v51, %v1024_v36  ;;  %v915_v8 = vmul.f32 %v2691_v47, %v906_v5  ;;  %v926_v20 = vmul.f32 %v2682_v45, %v906_v5  ;;  %v952_v59 = vmul.f32 %v2700_v54, %v906_v5  ;;  %v1211_v50 = vld [vmem:[%s3050_s5 + $0x28] sm:$0xff]  ;;  %v1210_v52 = vld [vmem:[%s3050_s5 + $0x20] sm:$0xff]  ;;  %v1209_v31 = vld [vmem:[%s3050_s5 + $0x18] sm:$0xff] }
 0x14f   :  { %v971_v30 = vadd.f32 %v964_v32, %v945_v39  ;;  %v978_v53 = vmul.f32 %v2706_v43, %v906_v5  ;;  %v1004_v12 = vmul.f32 %v2711_v63, %v906_v5  ;;  %v1306_v55 = vld [vmem:[%s3051_s6 + $0x18] sm:$0xff]  ;;  %v1305_v36 = vld [vmem:[%s3051_s6 + $0x10] sm:$0xff]  ;;  %v1207_v37 = vld [vmem:[%s3050_s5 + $0x8] sm:$0xff] }
 0x150   :  { %2060 = vtanh.f32 %v1034_v7  ;;  %v918_v13 = vadd.f32 %v915_v8, %v831_v4  ;;  %v934_v2 = vrot.slane %v926_v20, 1  ;;  %v960_v14 = vrot.slane %v952_v59, 2  ;;  %v1304_v38 = vld [vmem:[%s3051_s6 + $0x8] sm:$0xff]  ;;  %v1206_v4 = vld [vmem:[%s3050_s5] sm:$0xff]  ;;  %v1438_v32 = vld [vmem:[%s3052_s7 + $0x158] sm:$0xf] }
 0x151   :  { %v997_v57 = vadd.f32 %v990_v9, %v971_v30  ;;  %v986_v58 = vrot.slane %v978_v53, 3  ;;  %v1012_v61 = vrot.slane %v1004_v12, 4  ;;  %v1303_v39 = vld [vmem:[%s3051_s6] sm:$0xff]  ;;  %v1437_v9 = vld [vmem:[%s3052_s7 + $0x150] sm:$0xf]  ;;  %v1432_v12 = vld [vmem:[%s3052_s7 + $0x128] sm:$0xff] }
 0x152   :  { %v936_v47 = vsel %vm166_vm4, %v934_v2, %v935_v46  ;;  %v962_v54 = vsel %vm193_vm5, %v960_v14, %v961_v48  ;;  %v1212_v46 = vld [vmem:[%s3050_s5 + $0x30] sm:$0xff]  ;;  %v1439_v53 = vld [vmem:[%s3052_s7 + $0x160] sm:$0xf] }
 0x153   :  { %v1023_v45 = vadd.f32 %v1016_v15, %v997_v57  ;;  %v944_v60 = vadd.f32 %v936_v47, %v918_v13  ;;  %v988_v43 = vsel %vm220_vm6, %v986_v58, %v987_v62  ;;  %v1014_v19 = vsel %vm247_vm7, %v1012_v61, %v1013_v42  ;;  %v1309_v48 = vld [vmem:[%s3051_s6 + $0x30] sm:$0xff]  ;;  %v1307_v62 = vld [vmem:[%s3051_s6 + $0x20] sm:$0xff]  ;;  %v1440_v42 = vld [vmem:[%s3052_s7 + $0x168] sm:$0xf] }
 0x154   :  { %v1434_v13 = vld [vmem:[%s3052_s7 + $0x138] sm:$0xff]  ;;  %v1431_v2 = vld [vmem:[%s3052_s7 + $0x120] sm:$0xff]  ;;  %v1433_v14 = vld [vmem:[%s3052_s7 + $0x130] sm:$0xff] }
 0x155   :  { %v1033_v17 = vadd.f32 %v1851_v51, %v1023_v45  ;;  %v970_v18 = vadd.f32 %v962_v54, %v944_v60  ;;  %v1426_v57 = vld [vmem:[%s3052_s7 + $0xf8] sm:$0xff]  ;;  %v1428_v15 = vld [vmem:[%s3052_s7 + $0x108] sm:$0xff]  ;;  %v1425_v47 = vld [vmem:[%s3052_s7 + $0xf0] sm:$0xff] }
 0x156   :  { %v1427_v58 = vld [vmem:[%s3052_s7 + $0x100] sm:$0xff]  ;;  %v1420_v45 = vld [vmem:[%s3052_s7 + $0xc8] sm:$0xff]  ;;  %v1422_v60 = vld [vmem:[%s3052_s7 + $0xd8] sm:$0xff] }
 0x157   :  { %2062 = vtanh.f32 %v1033_v17  ;;  %v996_v63 = vadd.f32 %v988_v43, %v970_v18  ;;  %v1419_v54 = vld [vmem:[%s3052_s7 + $0xc0] sm:$0xff]  ;;  %v1421_v61 = vld [vmem:[%s3052_s7 + $0xd0] sm:$0xff]  ;;  %v1414_v17 = vld [vmem:[%s3052_s7 + $0x98] sm:$0xff] }
 0x158   :  { %v1416_v18 = vld [vmem:[%s3052_s7 + $0xa8] sm:$0xff]  ;;  %v1413_v43 = vld [vmem:[%s3052_s7 + $0x90] sm:$0xff] }
 0x159   :  { %v1022_v49 = vadd.f32 %v1014_v19, %v996_v63  ;;  %v1415_v63 = vld [vmem:[%s3052_s7 + $0xa0] sm:$0xff]  ;;  %v1408_v19 = vld [vmem:[%s3052_s7 + $0x68] sm:$0xff] }
 0x15b   :  { %v1032_v24 = vadd.f32 %v1851_v51, %v1022_v49  ;;  %v1308_v51 = vld [vmem:[%s3051_s6 + $0x28] sm:$0xff]  ;;  %v1410_v49 = vld [vmem:[%s3052_s7 + $0x78] sm:$0xff] }
 0x15d   :  { %v2061_v25 = vpop.eup %2060  ;;  %2064 = vtanh.f32 %v1032_v24  ;;  %v1407_v24 = vld [vmem:[%s3052_s7 + $0x60] sm:$0xff] }
 0x15e   :  { %1926 = vmatprep.subr.mxu0 %v2061_v25  ;;  %1935 = vmatprep.subr.mxu1 %v2061_v25 }
 0x15f   :  { %1927 = vmatpush3.msra.mxu0 %v2061_v25  ;;  %1936 = vmatpush3.msra.mxu1 %v2061_v25  ;;  %v1402_v25 = vld [vmem:[%s3052_s7 + $0x38] sm:$0xff] }
 0x164   :  { %v2063_v26 = vpop.eup %2062 }
 0x165   :  { %1928 = vmatprep.subr.mxu0 %v2063_v26  ;;  %1937 = vmatprep.subr.mxu1 %v2063_v26 }
 0x166   :  { %1929 = vmatpush3.msra.mxu0 %v2063_v26  ;;  %1938 = vmatpush3.msra.mxu1 %v2063_v26  ;;  %v1409_v26 = vld [vmem:[%s3052_s7 + $0x70] sm:$0xff] }
 0x16a   :  { %v2065_v6 = vpop.eup %2064 }
 0x16b   :  { %1930 = vmatprep.subr.mxu0 %v2065_v6  ;;  %1939 = vmatprep.subr.mxu1 %v2065_v6 }
 0x16c   :  { %1931 = vmatpush3.msra.mxu0 %v2065_v6  ;;  %1940 = vmatpush3.msra.mxu1 %v2065_v6  ;;  %v1401_v6 = vld [vmem:[%s3052_s7 + $0x30] sm:$0xff] }
 0x16d   :  { %1933 = vmatmul.mubr.msk.f32.vlgmr.msra.gmra.mxu0 %vm122_vm0, %v1039_v27  ;;  %1942 = vmatmul.mubr.msk.f32.vlgmr.msra.gmra.mxu1 %vm122_vm0, %v1122_v28  ;;  %v1404_v27 = vld [vmem:[%s3052_s7 + $0x48] sm:$0xff] }
 0x16e   :  { %1944 = vmatprep.subr.mxu0 %v1220_v3  ;;  %1977 = vmatprep.subr.mxu1 %v1317_v34  ;;  %v1396_v28 = vld [vmem:[%s3052_s7 + $0x8] sm:$0xff] }
 0x16f   :  { %1945 = vmatpush3.msra.mxu0 %v1220_v3  ;;  %1978 = vmatpush3.msra.mxu1 %v1317_v34  ;;  %v1403_v3 = vld [vmem:[%s3052_s7 + $0x40] sm:$0xff] }
 0x170   :  { %1946 = vmatprep.subr.mxu0 %v1219_v33  ;;  %1979 = vmatprep.subr.mxu1 %v1316_v11  ;;  %v1395_v34 = vld [vmem:[%s3052_s7] sm:$0xff] }
 0x171   :  { %1947 = vmatpush3.msra.mxu0 %v1219_v33  ;;  %1980 = vmatpush3.msra.mxu1 %v1316_v11  ;;  %v1398_v33 = vld [vmem:[%s3052_s7 + $0x18] sm:$0xff]  ;;  %v1397_v11 = vld [vmem:[%s3052_s7 + $0x10] sm:$0xff] }
 0x172   :  { %1948 = vmatprep.subr.mxu0 %v1218_v0  ;;  %1981 = vmatprep.subr.mxu1 %v1315_v29 }
 0x173   :  { %1949 = vmatpush3.msra.mxu0 %v1218_v0  ;;  %1982 = vmatpush3.msra.mxu1 %v1315_v29  ;;  %v1442_v0 = vld [vmem:[%s3052_s7 + $0x178] sm:$0xf]  ;;  %v2144_v29 = vmov 0.0  }
 0x174   :  { %1950 = vmatprep.subr.mxu0 %v1217_v21  ;;  %1983 = vmatprep.subr.mxu1 %v1314_v22 }
 0x175   :  { %1951 = vmatpush3.msra.mxu0 %v1217_v21  ;;  %1984 = vmatpush3.msra.mxu1 %v1314_v22 }
 0x176   :  { %1952 = vmatprep.subr.mxu0 %v1216_v23  ;;  %1985 = vmatprep.subr.mxu1 %v1313_v40 }
 0x177   :  { %1953 = vmatpush3.msra.mxu0 %v1216_v23  ;;  %1986 = vmatpush3.msra.mxu1 %v1313_v40 }
 0x178   :  { %1954 = vmatprep.subr.mxu0 %v1215_v41  ;;  %1987 = vmatprep.subr.mxu1 %v1312_v44 }
 0x179   :  { %1955 = vmatpush3.msra.mxu0 %v1215_v41  ;;  %1988 = vmatpush3.msra.mxu1 %v1312_v44  ;;  %v1441_v44 = vld [vmem:[%s3052_s7 + $0x170] sm:$0xf] }
 0x17a   :  { %1956 = vmatprep.subr.mxu0 %v1214_v35  ;;  %1989 = vmatprep.subr.mxu1 %v1311_v16 }
 0x17b   :  { %1957 = vmatpush3.msra.mxu0 %v1214_v35  ;;  %1990 = vmatpush3.msra.mxu1 %v1311_v16  ;;  %v1436_v35 = vld [vmem:[%s3052_s7 + $0x148] sm:$0xff]  ;;  %v1435_v16 = vld [vmem:[%s3052_s7 + $0x140] sm:$0xff] }
 0x17c   :  { %1958 = vmatprep.subr.mxu0 %v1213_v10  ;;  %1991 = vmatprep.subr.mxu1 %v1310_v1 }
 0x17d   :  { %1959 = vmatpush3.msra.mxu0 %v1213_v10  ;;  %1992 = vmatpush3.msra.mxu1 %v1310_v1  ;;  %v1430_v10 = vld [vmem:[%s3052_s7 + $0x118] sm:$0xff] }
 0x17e   :  { %1960 = vmatprep.subr.mxu0 %v1212_v46  ;;  %1993 = vmatprep.subr.mxu1 %v1309_v48 }
 0x17f   :  { %1961 = vmatpush3.msra.mxu0 %v1212_v46  ;;  %1994 = vmatpush3.msra.mxu1 %v1309_v48  ;;  %v1429_v46 = vld [vmem:[%s3052_s7 + $0x110] sm:$0xff]  ;;  %v1424_v48 = vld [vmem:[%s3052_s7 + $0xe8] sm:$0xff] }
 0x180   :  { %1962 = vmatprep.subr.mxu0 %v1211_v50  ;;  %1995 = vmatprep.subr.mxu1 %v1308_v51 }
 0x181   :  { %1963 = vmatpush3.msra.mxu0 %v1211_v50  ;;  %1996 = vmatpush3.msra.mxu1 %v1308_v51  ;;  %v1423_v50 = vld [vmem:[%s3052_s7 + $0xe0] sm:$0xff]  ;;  %v1418_v51 = vld [vmem:[%s3052_s7 + $0xb8] sm:$0xff] }
 0x182   :  { %1964 = vmatprep.subr.mxu0 %v1210_v52  ;;  %1997 = vmatprep.subr.mxu1 %v1307_v62 }
 0x183   :  { %1965 = vmatpush3.msra.mxu0 %v1210_v52  ;;  %1998 = vmatpush3.msra.mxu1 %v1307_v62  ;;  %v1417_v52 = vld [vmem:[%s3052_s7 + $0xb0] sm:$0xff]  ;;  %v1412_v62 = vld [vmem:[%s3052_s7 + $0x88] sm:$0xff] }
 0x184   :  { %1966 = vmatprep.subr.mxu0 %v1209_v31  ;;  %1999 = vmatprep.subr.mxu1 %v1306_v55 }
 0x185   :  { %1967 = vmatpush3.msra.mxu0 %v1209_v31  ;;  %2000 = vmatpush3.msra.mxu1 %v1306_v55  ;;  %v1411_v31 = vld [vmem:[%s3052_s7 + $0x80] sm:$0xff]  ;;  %v1406_v55 = vld [vmem:[%s3052_s7 + $0x58] sm:$0xff] }
 0x186   :  { %1968 = vmatprep.subr.mxu0 %v1208_v56  ;;  %2001 = vmatprep.subr.mxu1 %v1305_v36 }
 0x187   :  { %1969 = vmatpush3.msra.mxu0 %v1208_v56  ;;  %2002 = vmatpush3.msra.mxu1 %v1305_v36  ;;  %v1405_v56 = vld [vmem:[%s3052_s7 + $0x50] sm:$0xff]  ;;  %v1400_v36 = vld [vmem:[%s3052_s7 + $0x28] sm:$0xff] }
 0x188   :  { %1970 = vmatprep.subr.mxu0 %v1207_v37  ;;  %2003 = vmatprep.subr.mxu1 %v1304_v38 }
 0x189   :  { %1971 = vmatpush3.msra.mxu0 %v1207_v37  ;;  %2004 = vmatpush3.msra.mxu1 %v1304_v38  ;;  %v1399_v37 = vld [vmem:[%s3052_s7 + $0x20] sm:$0xff]  ;;  %s2146_s7 = smov 64  }
 0x18a   :  { %1972 = vmatprep.subr.mxu0 %v1206_v4  ;;  %2005 = vmatprep.subr.mxu1 %v1303_v39 }
 0x18b   :  { %1973 = vmatpush3.msra.mxu0 %v1206_v4  ;;  %2006 = vmatpush3.msra.mxu1 %v1303_v39 }
 0x18c   :  { %1860 = vmatprep.subr.msk.mxu0 %vm247_vm7, %v1438_v32  ;;  %1864 = vmatprep.subr.msk.mxu1 %vm247_vm7, %v1440_v42 }
 0x22d   :  { %v1934_v5 = vpop.f32.mrf.mxu0  ;;  %v1943_v7 = vpop.f32.mrf.mxu1 }
 0x22e   :  { %v1205_v30 = vmax.f32 %v1934_v5, %v1943_v7 }
 0x22f   :  { %v1112_v8 = vpop.f32.mrf.mxu0  ;;  %v1195_v20 = vpop.f32.mrf.mxu1 }
 0x230   :  { %v1204_v59 = vmax.f32 %v1112_v8, %v1195_v20 }
 0x232   :  { %1974 = vmatprep.mubr.msk.f32.mxu0 %vm1221_vm8, %v1204_v59  ;;  %2007 = vmatprep.mubr.msk.f32.mxu1 %vm1221_vm8, %v1204_v59 }
 0x233   :  { %1975 = vmatmul.mubr.msk.f32.vlgmr.msra.gmra.mxu0 %vm1221_vm8, %v1205_v30  ;;  %2008 = vmatmul.mubr.msk.f32.vlgmr.msra.gmra.mxu1 %vm1221_vm8, %v1205_v30 }
 0x234   :  { %1861 = vmatpush1.msk.msra.mxu0 %vm247_vm7, %v1437_v9  ;;  %1865 = vmatpush1.msk.msra.mxu1 %vm247_vm7, %v1439_v53 }
 0x235   :  { %1486 = vmatprep.subr.mxu0 %v1432_v12  ;;  %1561 = vmatprep.subr.mxu1 %v1434_v13 }
 0x236   :  { %1487 = vmatpush1.msra.mxu0 %v1431_v2  ;;  %1562 = vmatpush1.msra.mxu1 %v1433_v14  ;;  %v1727_v2 = vld [vmem:[#allocation4 + $0x38] sm:$0xff] }
 0x237   :  { %1488 = vmatprep.subr.mxu0 %v1426_v57  ;;  %1563 = vmatprep.subr.mxu1 %v1428_v15  ;;  %v1726_v57 = vld [vmem:[#allocation4 + $0x30] sm:$0xff] }
 0x238   :  { %1489 = vmatpush1.msra.mxu0 %v1425_v47  ;;  %1564 = vmatpush1.msra.mxu1 %v1427_v58  ;;  %v1725_v47 = vld [vmem:[#allocation4 + $0x28] sm:$0xff] }
 0x239   :  { %1490 = vmatprep.subr.mxu0 %v1420_v45  ;;  %1565 = vmatprep.subr.mxu1 %v1422_v60 }
 0x23a   :  { %1491 = vmatpush1.msra.mxu0 %v1419_v54  ;;  %1566 = vmatpush1.msra.mxu1 %v1421_v61  ;;  %v1724_v54 = vld [vmem:[#allocation4 + $0x20] sm:$0xff] }
 0x23b   :  { %1492 = vmatprep.subr.mxu0 %v1414_v17  ;;  %1567 = vmatprep.subr.mxu1 %v1416_v18  ;;  %v1723_v17 = vld [vmem:[#allocation4 + $0x18] sm:$0xff] }
 0x23c   :  { %1493 = vmatpush1.msra.mxu0 %v1413_v43  ;;  %1568 = vmatpush1.msra.mxu1 %v1415_v63  ;;  %v1722_v43 = vld [vmem:[#allocation4 + $0x10] sm:$0xff]  ;;  %v1721_v63 = vld [vmem:[#allocation4 + $0x8] sm:$0xff] }
 0x23d   :  { %1494 = vmatprep.subr.mxu0 %v1408_v19  ;;  %1569 = vmatprep.subr.mxu1 %v1410_v49  ;;  %v1720_v19 = vld [vmem:[#allocation4] sm:$0xff]  ;;  %v1717_v49 = vld [vmem:[%s3053_s8] sm:$0x1] }
 0x23e   :  { %1495 = vmatpush1.msra.mxu0 %v1407_v24  ;;  %1570 = vmatpush1.msra.mxu1 %v1409_v26 }
 0x23f   :  { %1496 = vmatprep.subr.mxu0 %v1402_v25  ;;  %1571 = vmatprep.subr.mxu1 %v1404_v27  ;;  %v1803_v27 = vlaneseq }
 0x240   :  { %1497 = vmatpush1.msra.mxu0 %v1401_v6  ;;  %1572 = vmatpush1.msra.mxu1 %v1403_v3  ;;  %v1728_v3 = vld [vmem:[%s3055_s10] sm:$0x1] }
 0x241   :  { %1498 = vmatprep.subr.mxu0 %v1396_v28  ;;  %1573 = vmatprep.subr.mxu1 %v1398_v33  ;;  %v1804_v28 = vand.u32 127, %v1803_v27 }
 0x242   :  { %1499 = vmatpush1.msra.mxu0 %v1395_v34  ;;  %1532 = vmatprep.mubr.f32.mxu0 %v2144_v29 }
 0x243   :  { %1574 = vmatpush1.msra.mxu1 %v1397_v11  ;;  %1607 = vmatprep.mubr.f32.mxu1 %v2144_v29  ;;  %vm1805_vm12 = vcmp.lt.s32.totalorder %v1804_v28, 10 }
 0x244   :  { %1868 = vmatprep.subr.msk.mxu0 %vm247_vm7, %v1442_v0  ;;  %2010 = vmatprep.subr.mxu1 %v2144_v29 }
 0x2f3   :  { %v1976_v21 = vpop.f32.mrf.mxu0  ;;  %v2009_v22 = vpop.f32.mrf.mxu1 }
 0x2f4   :  { %v1394_v1 = vmax.f32 %v1976_v21, %v2009_v22 }
 0x2f5   :  { %v1294_v23 = vpop.f32.mrf.mxu0  ;;  %v1384_v40 = vpop.f32.mrf.mxu1 }
 0x2f6   :  { %v1393_v41 = vmax.f32 %v1294_v23, %v1384_v40 }
 0x2f8   :  { %1862 = vmatmul.mubr.msk.f32.vlgmr.msra.gmra.mxu0 %vm1443_vm9, %v1393_v41  ;;  %1866 = vmatmul.mubr.msk.f32.vlgmr.msra.gmra.mxu1 %vm1443_vm9, %v1393_v41 }
 0x2f9   :  { %1869 = vmatpush1.msk.msra.mxu0 %vm247_vm7, %v1441_v44  ;;  %1538 = vmatprep.mubr.f32.mxu0 %v2144_v29 }
 0x2fa   :  { %1636 = vmatprep.subr.mxu0 %v1436_v35  ;;  %1613 = vmatprep.mubr.f32.mxu1 %v2144_v29 }
 0x2fb   :  { %1637 = vmatpush1.msra.mxu0 %v1435_v16  ;;  %2011 = vmatpush3.msra.mxu1 %v1727_v2 }
 0x2fc   :  { %1638 = vmatprep.subr.mxu0 %v1430_v10  ;;  %1863 = vmatmul.mubr.msk.f32.gmra.mxu0 %vm1443_vm9, %v1394_v1 }
 0x2fd   :  { %1867 = vmatmul.mubr.msk.f32.gmra.mxu1 %vm1443_vm9, %v1394_v1  ;;  %1639 = vmatpush1.msra.mxu0 %v1429_v46 }
 0x2fe   :  { %1640 = vmatprep.subr.mxu0 %v1424_v48  ;;  %1682 = vmatprep.mubr.f32.mxu0 %v2144_v29 }
 0x2ff   :  { %1641 = vmatpush1.msra.mxu0 %v1423_v50  ;;  %2012 = vmatprep.subr.mxu1 %v2144_v29 }
 0x300   :  { %1642 = vmatprep.subr.mxu0 %v1418_v51  ;;  %2026 = vmatprep.mubr.msk.f32.mxu1 %vm2145_vm10, %v2144_v29 }
 0x301   :  { %1643 = vmatpush1.msra.mxu0 %v1417_v52  ;;  %2013 = vmatpush3.msra.mxu1 %v1726_v57 }
 0x302   :  { %1644 = vmatprep.subr.mxu0 %v1412_v62  ;;  %2014 = vmatprep.subr.mxu1 %v2144_v29 }
 0x303   :  { %1645 = vmatpush1.msra.mxu0 %v1411_v31  ;;  %2015 = vmatpush3.msra.mxu1 %v1725_v47 }
 0x304   :  { %1646 = vmatprep.subr.mxu0 %v1406_v55  ;;  %2016 = vmatprep.subr.mxu1 %v2144_v29 }
 0x305   :  { %1647 = vmatpush1.msra.mxu0 %v1405_v56  ;;  %2017 = vmatpush3.msra.mxu1 %v1724_v54 }
 0x306   :  { %1648 = vmatprep.subr.mxu0 %v1400_v36  ;;  %2018 = vmatprep.subr.mxu1 %v2144_v29 }
 0x307   :  { %1649 = vmatpush1.msra.mxu0 %v1399_v37  ;;  %2019 = vmatpush3.msra.mxu1 %v1723_v17 }
 0x308   :  { %1870 = vmatmul.mubr.msk.f32.vlgmr.msra.gmra.mxu0 %vm1443_vm9, %v1393_v41  ;;  %2020 = vmatprep.subr.mxu1 %v2144_v29 }
 0x309   :  { %1686 = vmatprep.mubr.f32.mxu0 %v2144_v29  ;;  %2021 = vmatpush3.msra.mxu1 %v1722_v43 }
 0x30a   :  { %2022 = vmatprep.subr.mxu1 %v2144_v29 }
 0x30b   :  { %2023 = vmatpush3.msra.mxu1 %v1721_v63 }
 0x30c   :  { %1871 = vmatmul.mubr.msk.f32.gmra.mxu0 %vm1443_vm9, %v1394_v1  ;;  %2024 = vmatprep.subr.mxu1 %v2144_v29 }
 0x30d   :  { %2025 = vmatpush3.msra.mxu1 %v1720_v19 }
 0x3b8   :  { %v1534_v38 = vpop.f32.mrf.mxu0  ;;  %v1609_v4 = vpop.f32.mrf.mxu1 }
 0x3b9   :  { %v1699_v30 = vrot.slane %v1609_v4, 4 }
 0x3ba   :  { %v1536_v39 = vpop.f32.mrf.mxu0  ;;  %v1611_v32 = vpop.f32.mrf.mxu1 }
 0x3bb   :  { %v1695_v20 = vrot.slane %v1536_v39, 2  ;;  %v1703_v13 = vrot.slane %v1611_v32, 6 }
 0x3bc   :  { %v1540_v42 = vpop.f32.mrf.mxu0 }
 0x3bd   :  { %v1615_v5 = vpop.f32.mrf.mxu1  ;;  %v1697_v59 = vadd.f32 %v1695_v20, %v1534_v38 }
 0x3be   :  { %v1541_v7 = vpop.f32.mrf.mxu0 }
 0x3bf   :  { %v1616_v8 = vpop.f32.mrf.mxu1  ;;  %v1701_v53 = vadd.f32 %v1699_v30, %v1697_v59 }
 0x3c1   :  { %v1705_v15 = vadd.f32 %v1703_v13, %v1701_v53 }
 0x3c8   :  { %v1684_v9 = vpop.f32.mrf.mxu0 }
 0x3ca   :  { %v1685_v12 = vpop.f32.mrf.mxu0 }
 0x3cc   :  { %v1688_v14 = vpop.f32.mrf.mxu0 }
 0x3cd   :  { %v1706_v45 = vadd.f32 %v1705_v15, %v1688_v14 }
 0x3ce   :  { %v1690_v58 = vpop.f32.mrf.mxu0 }
 0x3cf   :  { %v1708_v60 = vrot.slane %v1690_v58, 2 }
 0x3d1   :  { %v1710_v61 = vadd.f32 %v1708_v60, %v1706_v45 }
 0x3d3   :  { %v1712_v18 = vrot.slane %v1710_v61, 1 }
 0x3d5   :  { %1713 = vrot.lane.b32.xlu0 %v1712_v18, %s2146_s7 }
 0x447   :  { %v1714_v24 = vpop.permute.xlu0 %1713 }
 0x448   :  { %v1716_v25 = vadd.f32 %v1714_v24, %v1710_v61 }
 0x44a   :  { %v1718_v26 = vadd.f32 %v1717_v49, %v1716_v25 }
 0x44c   :  { %2066 = vtanh.f32 %v1718_v26 }
 0x459   :  { %v2067_v6 = vpop.eup %2066 }
 0x45a   :  { %2027 = vmatmul.mubr.msk.f32.vlgmr.msra.gmra.mxu1 %vm1729_vm11, %v2067_v6 }
 0x51a   :  { %v1799_v34 = vpop.f32.mrf.mxu1 }
 0x51b   :  { %v1800_v33 = vadd.f32 %v1799_v34, %v1728_v3 }
 0x51c   :  { %v2028_v11 = vpop.f32.mrf.mxu1 }
 0x51d   :  { %v1806_v0 = vsel %vm1805_vm12, %v1800_v33, -1e+30 }
 0x51e   :  { %v1808_v29 = vsel %vm1807_vm13, %v1806_v0, -inf }
 0x51f   :  { %1809 = vmax.xlane.f32.xlu1 %v1808_v29 }
 0x5a8   :  { %v1810_v21 = vpop.xlane.xlu1 %1809 }
 0x5a9   :  { %v1811_v22 = vsub.f32 %v1806_v0, %v1810_v21 }
 0x5ab   :  { %v1812_v23 = vmul.f32 1.442695, %v1811_v22 }
 0x5ad   :  { %2068 = vpow2.f32 %v1812_v23 }
 0x5ba   :  { %v2069_v40 = vpop.eup %2068 }
 0x5bb   :  { %v1814_v41 = vsel %vm1807_vm13, %v2069_v40, 0.0 }
 0x5bc   :  { %1815 = vadd.xlane.f32.xlu0 %v1814_v41 }
 0x645   :  { %v1816_v44 = vpop.xlane.xlu0 %1815 }
 0x646   :  { %2070 = vrcp.f32 %v1816_v44 }
 0x653   :  { %v2071_v35 = vpop.eup %2070 }
 0x654   :  { %v1818_v16 = vmul.f32 %v2071_v35, %v2069_v40 }
 0x656   :  { %1819 = vst [vmem:[%s3056_s11] sm:$0x1] %v1818_v16 }
 0x657   :  { %1824 = vsyncpa [#allocation3], 1 }
 0x658   :  { %1825 = vsyncpa [#allocation5], 1 }

</bundles_post_ra>
